<compile_context>
chip_gen: v7x
topology: tpu7x:2x2x1
jax: 0.10.0
libtpu: 0.0.40
codegen_flags: <defaults>
</compile_context>

<pallas_src>
import math
from functools import partial

import numpy as np
import jax
import jax.numpy as jnp
from jax.experimental import pallas as pl
from jax.experimental.pallas import tpu as pltpu


# Matmul operand dtype (MXU native on v5e/v6e/v7x); accumulation stays f32.
MATMUL_DTYPE = jnp.bfloat16
# Explicit scoped-VMEM limit: above the v5e 16 MiB default, at the v6e/v7x
# scoped default, and safely below v7x's 64 MiB physical VMEM.
VMEM_LIMIT = 32 * 1024 * 1024


def _pick_tile(dim, candidates):
    """Largest candidate tile that evenly divides dim, else the full dim."""
    for c in candidates:
        if dim >= c and dim % c == 0:
            return c
    return dim


# ----------------------------------------------------------------------------
# In-kernel exact GELU
# ----------------------------------------------------------------------------
def _erf_f32(x):
    # TODO(synk): lax.erf has no guaranteed Mosaic lowering; use the
    # Abramowitz & Stegun 7.1.26 polynomial (|err| < 1.5e-7 ~ f32 resolution)
    # so the exact-erf GELU (nn.GELU approximate='none') can be fused in-kernel.
    p = 0.3275911
    a1, a2, a3, a4, a5 = 0.254829592, -0.284496736, 1.421413741, -1.453152027, 1.061405429
    ax = jnp.abs(x)
    t = 1.0 / (1.0 + p * ax)
    poly = t * (a1 + t * (a2 + t * (a3 + t * (a4 + t * a5))))
    y = 1.0 - poly * jnp.exp(-ax * ax)          # exp goes to the EUP slot
    return jnp.where(x >= 0, y, -y)


def _gelu_exact_f32(x):
    return 0.5 * x * (1.0 + _erf_f32(x * 0.7071067811865476))


# ----------------------------------------------------------------------------
# Tiled matmul kernel (optional fused residual add / GELU epilogue)
# ----------------------------------------------------------------------------
def _linear_kernel(x_ref, w_ref, b_ref, *rest, has_residual, activation):
    if has_residual:
        res_ref, o_ref, acc_ref = rest
    else:
        o_ref, acc_ref = rest

    @pl.when(pl.program_id(2) == 0)
    def _():
        acc_ref[...] = jnp.zeros_like(acc_ref)

    acc_ref[...] += jnp.dot(x_ref[...], w_ref[...],
                            preferred_element_type=jnp.float32)

    @pl.when(pl.program_id(2) == pl.num_programs(2) - 1)
    def _():
        y = acc_ref[...] + b_ref[...].astype(jnp.float32)
        if activation == "gelu":
            y = _gelu_exact_f32(y)
        if has_residual:
            y = y + res_ref[...].astype(jnp.float32)
        o_ref[...] = y.astype(o_ref.dtype)


def pallas_linear(x, w, b, residual=None, activation=None, out_dtype=jnp.float32):
    """y = activation(x @ w + b) [+ residual].  x:(M,K) w:(K,N) b:(N,)."""
    M, K = x.shape
    N = w.shape[1]
    tm = _pick_tile(M, (512, 256, 128))
    tn = _pick_tile(N, (512, 256, 128))
    tk = _pick_tile(K, (512, 256, 128))
    grid = (M // tm, N // tn, K // tk)

    in_specs = [
        pl.BlockSpec((tm, tk), lambda i, j, k: (i, k)),
        pl.BlockSpec((tk, tn), lambda i, j, k: (k, j)),
        pl.BlockSpec((1, tn), lambda i, j, k: (0, j)),
    ]
    args = [x, w, b.reshape(1, N)]
    if residual is not None:
        in_specs.append(pl.BlockSpec((tm, tn), lambda i, j, k: (i, j)))
        args.append(residual)
        out_dtype = residual.dtype

    bytes_accessed = (M * K * x.dtype.itemsize + K * N * w.dtype.itemsize
                      + M * N * np.dtype(out_dtype).itemsize
                      + (M * N * residual.dtype.itemsize if residual is not None else 0))
    cost = pl.CostEstimate(
        flops=2 * M * N * K,
        transcendentals=(M * N if activation == "gelu" else 0),
        bytes_accessed=int(bytes_accessed))

    return pl.pallas_call(
        partial(_linear_kernel, has_residual=residual is not None,
                activation=activation),
        out_shape=jax.ShapeDtypeStruct((M, N), out_dtype),
        grid=grid,
        in_specs=in_specs,
        out_specs=pl.BlockSpec((tm, tn), lambda i, j, k: (i, j)),
        scratch_shapes=[pltpu.VMEM((tm, tn), jnp.float32)],
        compiler_params=pltpu.CompilerParams(
            dimension_semantics=("parallel", "parallel", "arbitrary"),
            vmem_limit_bytes=VMEM_LIMIT),
        cost_estimate=cost,
    )(*args)


# ----------------------------------------------------------------------------
# Fused LayerNorm -> matmul (-> GELU) kernel.  K (=embed dim) kept untiled so
# the row statistics are computed once per row tile inside the kernel.
# ----------------------------------------------------------------------------
def _ln_linear_kernel(x_ref, g_ref, bt_ref, w_ref, b_ref, o_ref, *, eps, activation):
    x = x_ref[...].astype(jnp.float32)
    mean = jnp.mean(x, axis=-1, keepdims=True)
    xc = x - mean
    var = jnp.mean(xc * xc, axis=-1, keepdims=True)     # biased, as nn.LayerNorm
    xn = xc * jax.lax.rsqrt(var + eps)
    xn = xn * g_ref[...].astype(jnp.float32) + bt_ref[...].astype(jnp.float32)
    y = jnp.dot(xn.astype(w_ref.dtype), w_ref[...],
                preferred_element_type=jnp.float32) + b_ref[...].astype(jnp.float32)
    if activation == "gelu":
        y = _gelu_exact_f32(y)
    o_ref[...] = y.astype(o_ref.dtype)


def pallas_ln_linear(x, gamma, beta, w, b, activation=None,
                     out_dtype=MATMUL_DTYPE, eps=1e-5):
    M, K = x.shape
    N = w.shape[1]
    tm = _pick_tile(M, (256, 128))
    tn = _pick_tile(N, (512, 256, 128))
    grid = (M // tm, N // tn)

    cost = pl.CostEstimate(
        flops=2 * M * N * K,
        transcendentals=int((M * N if activation == "gelu" else 0) + M),
        bytes_accessed=int(M * K * x.dtype.itemsize + K * N * w.dtype.itemsize
                           + M * N * np.dtype(out_dtype).itemsize))

    return pl.pallas_call(
        partial(_ln_linear_kernel, eps=eps, activation=activation),
        out_shape=jax.ShapeDtypeStruct((M, N), out_dtype),
        grid=grid,
        in_specs=[
            pl.BlockSpec((tm, K), lambda i, j: (i, 0)),
            pl.BlockSpec((1, K), lambda i, j: (0, 0)),
            pl.BlockSpec((1, K), lambda i, j: (0, 0)),
            pl.BlockSpec((K, tn), lambda i, j: (0, j)),
            pl.BlockSpec((1, tn), lambda i, j: (0, j)),
        ],
        out_specs=pl.BlockSpec((tm, tn), lambda i, j: (i, j)),
        compiler_params=pltpu.CompilerParams(
            dimension_semantics=("parallel", "parallel"),
            vmem_limit_bytes=VMEM_LIMIT),
        cost_estimate=cost,
    )(x, gamma.reshape(1, K), beta.reshape(1, K), w, b.reshape(1, N))


# ----------------------------------------------------------------------------
# Standalone row-tiled LayerNorm (final norm)
# ----------------------------------------------------------------------------
def _layernorm_kernel(x_ref, g_ref, b_ref, o_ref, *, eps):
    x = x_ref[...].astype(jnp.float32)
    mean = jnp.mean(x, axis=-1, keepdims=True)
    xc = x - mean
    var = jnp.mean(xc * xc, axis=-1, keepdims=True)
    y = xc * jax.lax.rsqrt(var + eps)
    o_ref[...] = (y * g_ref[...] + b_ref[...]).astype(o_ref.dtype)


def pallas_layernorm(x, gamma, beta, eps=1e-5):
    M, D = x.shape
    tm = _pick_tile(M, (1024, 512, 256, 128))
    return pl.pallas_call(
        partial(_layernorm_kernel, eps=eps),
        out_shape=jax.ShapeDtypeStruct((M, D), x.dtype),
        grid=(M // tm,),
        in_specs=[
            pl.BlockSpec((tm, D), lambda i: (i, 0)),
            pl.BlockSpec((1, D), lambda i: (0, 0)),
            pl.BlockSpec((1, D), lambda i: (0, 0)),
        ],
        out_specs=pl.BlockSpec((tm, D), lambda i: (i, 0)),
        compiler_params=pltpu.CompilerParams(
            dimension_semantics=("parallel",),
            vmem_limit_bytes=VMEM_LIMIT),
    )(x, gamma.reshape(1, D), beta.reshape(1, D))


# ----------------------------------------------------------------------------
# Multi-head attention: all heads of one batch element per grid step, reading
# the (N, 3D) QKV slab directly and writing a lane-dense (N, D) output.
# ----------------------------------------------------------------------------
def _attention_kernel(qkv_ref, o_ref, *, num_heads, head_dim, scale):
    D = num_heads * head_dim
    qkv = qkv_ref[0]                        # (N, 3D)
    outs = []
    for h in range(num_heads):
        q = qkv[:, h * head_dim:(h + 1) * head_dim]
        k = qkv[:, D + h * head_dim:D + (h + 1) * head_dim]
        v = qkv[:, 2 * D + h * head_dim:2 * D + (h + 1) * head_dim]
        s = jax.lax.dot_general(q, k, (((1,), (1,)), ((), ())),
                                preferred_element_type=jnp.float32) * scale
        s = s - jnp.max(s, axis=-1, keepdims=True)
        p = jnp.exp(s)
        p = p * pl.reciprocal(jnp.sum(p, axis=-1, keepdims=True), approx=True)
        outs.append(jnp.dot(p.astype(v.dtype), v,
                            preferred_element_type=jnp.float32))
    o_ref[0] = jnp.concatenate(outs, axis=-1).astype(o_ref.dtype)


def pallas_attention(qkv, num_heads, head_dim, scale):
    """qkv: (B, N, 3D) -> (B, N, D) with D = num_heads * head_dim."""
    B, N, threeD = qkv.shape
    D = num_heads * head_dim
    cost = pl.CostEstimate(
        flops=4 * B * num_heads * N * N * head_dim,
        transcendentals=B * num_heads * N * N,
        bytes_accessed=int(B * N * (threeD + D) * qkv.dtype.itemsize))
    return pl.pallas_call(
        partial(_attention_kernel, num_heads=num_heads,
                head_dim=head_dim, scale=scale),
        out_shape=jax.ShapeDtypeStruct((B, N, D), qkv.dtype),
        grid=(B,),
        in_specs=[pl.BlockSpec((1, N, threeD), lambda b: (b, 0, 0))],
        out_specs=pl.BlockSpec((1, N, D), lambda b: (b, 0, 0)),
        compiler_params=pltpu.CompilerParams(
            dimension_semantics=("parallel",),
            vmem_limit_bytes=VMEM_LIMIT),
        cost_estimate=cost,
    )(qkv)


# ----------------------------------------------------------------------------
# Parameter construction (deterministic, synthetic)
# ----------------------------------------------------------------------------
def cosine_pos_embed(num_patches, dim, num_tokens):
    """Standard sinusoidal position embedding; cls-token rows are zero."""
    pe = np.zeros((num_patches + num_tokens, dim), dtype=np.float32)
    pos = np.arange(num_patches, dtype=np.float32)[:, None]
    div = np.exp(np.arange(0, dim, 2, dtype=np.float32) * (-math.log(10000.0) / dim))
    pe[num_tokens:, 0::2] = np.sin(pos * div)
    pe[num_tokens:, 1::2] = np.cos(pos * div)
    return jnp.asarray(pe)[None]  # (1, N, D)


def init_params(key, cfg):
    C, ps, D = cfg["in_chans"], cfg["patch_size"], cfg["embed_dim"]
    depth = cfg["depth"]
    hidden = int(D * cfg["mlp_ratio"])
    num_patches = (cfg["img_size"] // ps) ** 2
    num_tokens = 1 if cfg["pool"] == "cls" else 0

    def tn(k, shape, std=0.02):  # trunc_normal_(std=0.02) analogue
        return (std * jax.random.truncated_normal(k, -2.0, 2.0, shape)).astype(jnp.float32)

    keys = iter(jax.random.split(key, 1 + 4 * depth))
    params = {}
    conv_w = tn(next(keys), (D, C, ps, ps))                      # Conv2d weight layout
    params["patch_w"] = conv_w.reshape(D, C * ps * ps).T         # (C*ps*ps, D)
    params["patch_b"] = jnp.zeros((D,), jnp.float32)
    params["cls_token"] = jnp.zeros((1, 1, D), jnp.float32)      # zeros, as in __init__
    params["pos_embed"] = cosine_pos_embed(num_patches, D, num_tokens)

    blocks = []
    for _ in range(depth):
        blocks.append(dict(
            ln1_g=jnp.ones((D,), jnp.float32), ln1_b=jnp.zeros((D,), jnp.float32),
            qkv_w=tn(next(keys), (D, 3 * D)),  qkv_b=jnp.zeros((3 * D,), jnp.float32),
            proj_w=tn(next(keys), (D, D)),     proj_b=jnp.zeros((D,), jnp.float32),
            ln2_g=jnp.ones((D,), jnp.float32), ln2_b=jnp.zeros((D,), jnp.float32),
            fc1_w=tn(next(keys), (D, hidden)), fc1_b=jnp.zeros((hidden,), jnp.float32),
            fc2_w=tn(next(keys), (hidden, D)), fc2_b=jnp.zeros((D,), jnp.float32),
        ))
    params["blocks"] = blocks
    params["norm_g"] = jnp.ones((D,), jnp.float32)
    params["norm_b"] = jnp.zeros((D,), jnp.float32)
    return params


# ----------------------------------------------------------------------------
# Forward pass
# ----------------------------------------------------------------------------
def vit_forward(params, x, cfg):
    """x: (B, C, H, W) float32, NCHW (PyTorch conv layout)."""
    B, C, H, W = x.shape
    ps, D, nh = cfg["patch_size"], cfg["embed_dim"], cfg["num_heads"]
    gh, gw = H // ps, W // ps
    P = gh * gw
    hd = D // nh
    scale = hd ** (-0.5)
    cast = lambda a: a.astype(MATMUL_DTYPE)

    # --- PatchEmbed: strided conv == im2col + Pallas matmul ------------------
    patches = (x.reshape(B, C, gh, ps, gw, ps)
                 .transpose(0, 2, 4, 1, 3, 5)        # (B, gh, gw, C, ps, ps)
                 .reshape(B * P, C * ps * ps))
    tok = pallas_linear(cast(patches), cast(params["patch_w"]), params["patch_b"],
                        out_dtype=jnp.float32).reshape(B, P, D)

    # --- prepend cls token, add cosine position embedding --------------------
    cls = jnp.broadcast_to(params["cls_token"], (B, 1, D))
    xt = jnp.concatenate([cls, tok], axis=1) + params["pos_embed"]   # (B, N, D) f32
    N = xt.shape[1]
    xt = xt.reshape(B * N, D)        # f32 residual stream, kept 2-D throughout
    # dropout(p=0.0) in eval -> identity

    # --- transformer blocks ---------------------------------------------------
    for blk in params["blocks"]:
        # attention branch: LN fused into QKV matmul; residual fused into proj
        qkv = pallas_ln_linear(xt, blk["ln1_g"], blk["ln1_b"],
                               cast(blk["qkv_w"]), blk["qkv_b"])      # (B*N,3D) bf16
        attn = pallas_attention(qkv.reshape(B, N, 3 * D), nh, hd, scale)  # (B,N,D)
        xt = pallas_linear(attn.reshape(B * N, D), cast(blk["proj_w"]),
                           blk["proj_b"], residual=xt)                # (B*N,D) f32

        # MLP branch: LN + exact GELU fused into fc1; residual fused into fc2
        h = pallas_ln_linear(xt, blk["ln2_g"], blk["ln2_b"],
                             cast(blk["fc1_w"]), blk["fc1_b"], activation="gelu")
        xt = pallas_linear(h, cast(blk["fc2_w"]), blk["fc2_b"], residual=xt)

    # --- final norm + pooling -------------------------------------------------
    xt = pallas_layernorm(xt, params["norm_g"], params["norm_b"]).reshape(B, N, D)
    if cfg["pool"] == "cls":
        out = xt[:, 0]
    else:
        out = xt.mean(axis=1)
    return out  # (B, D); classification=False -> no class head


# ----------------------------------------------------------------------------
if __name__ == "__main__":
    cfg = dict(
        img_size=16,
        patch_size=8,     # -> 2x2 grid, 4 patches, 5 tokens with cls
        in_chans=4,
        embed_dim=32,
        depth=2,
        num_heads=4,      # head_dim = 8
        mlp_ratio=4.0,
        pool="cls",
    )
    key = jax.random.PRNGKey(0)
    pkey, xkey = jax.random.split(key)
    params = init_params(pkey, cfg)
    x = jax.random.normal(
        xkey, (2, cfg["in_chans"], cfg["img_size"], cfg["img_size"]), dtype=jnp.float32)

    fwd = jax.jit(partial(vit_forward, cfg=cfg))
    out = fwd(params, x)
    out = jax.block_until_ready(out)
    assert out.shape == (2, cfg["embed_dim"]), out.shape
    assert bool(jnp.all(jnp.isfinite(out)))
    print("KERNEL_OK")
</pallas_src>

<mosaic_0001>
module attributes {stable_mosaic.version = 11 : i64} {
  func.func @_linear_kernel(%arg0: i32, %arg1: i32, %arg2: i32, %arg3: memref<8x256xbf16, #tpu.memory_space<vmem>>, %arg4: memref<256x32xbf16, #tpu.memory_space<vmem>>, %arg5: memref<1x32xf32, #tpu.memory_space<vmem>>, %arg6: memref<8x32xf32, #tpu.memory_space<vmem>>, %arg7: memref<8x32xf32, #tpu.memory_space<vmem>>) attributes {dimension_semantics = [#tpu.dimension_semantics<parallel>, #tpu.dimension_semantics<parallel>, #tpu.dimension_semantics<arbitrary>], iteration_bounds = array<i64: 1, 1, 1>, scalar_prefetch = 0 : i64, scratch_operands = 1 : i64, tpu.core_type = #tpu.core_type<tc>, window_params = [{transform_indices = @transform_0, window_bounds = array<i64: 8, 256>}, {transform_indices = @transform_1, window_bounds = array<i64: 256, 32>}, {transform_indices = @transform_2, window_bounds = array<i64: 1, 32>}, {transform_indices = @transform_3, window_bounds = array<i64: 8, 32>}]} {
    %c0_i32 = arith.constant 0 : i32
    %0 = arith.cmpi eq, %arg2, %c0_i32 : i32
    %1 = arith.extui %0 : i1 to i32
    %c0_i32_0 = arith.constant 0 : i32
    %2 = arith.cmpi ne, %1, %c0_i32_0 : i32
    scf.if %2 {
      %cst_10 = arith.constant 0.000000e+00 : f32
      %12 = vector.broadcast %cst_10 : f32 to vector<8x32xf32>
      %c0_11 = arith.constant 0 : index
      %c0_12 = arith.constant 0 : index
      %13 = vector.load %arg7[%c0_11, %c0_12] : memref<8x32xf32, #tpu.memory_space<vmem>>, vector<8x32xf32>
      tpu.vector_store %arg7[%c0_11, %c0_12], %12 {strides = array<i32>} : memref<8x32xf32, #tpu.memory_space<vmem>>, vector<8x32xf32>,
    } else {
    }
    %c0 = arith.constant 0 : index
    %c0_1 = arith.constant 0 : index
    %3 = vector.load %arg7[%c0, %c0_1] : memref<8x32xf32, #tpu.memory_space<vmem>>, vector<8x32xf32>
    %c0_2 = arith.constant 0 : index
    %c0_3 = arith.constant 0 : index
    %4 = vector.load %arg3[%c0_2, %c0_3] : memref<8x256xbf16, #tpu.memory_space<vmem>>, vector<8x256xbf16>
    %c0_4 = arith.constant 0 : index
    %c0_5 = arith.constant 0 : index
    %5 = vector.load %arg4[%c0_4, %c0_5] : memref<256x32xbf16, #tpu.memory_space<vmem>>, vector<256x32xbf16>
    %cst = arith.constant dense<0.000000e+00> : vector<8x32xf32>
    %6 = tpu.matmul %4, %5, %cst {dimension_numbers = #tpu.dot_dimension_numbers<[1], [0], [0], [1], [0, 0, 1, 1], [], []>} : vector<8x256xbf16>, vector<256x32xbf16>, vector<8x32xf32> -> vector<8x32xf32>
    %7 = arith.addf %3, %6 : vector<8x32xf32>
    %c0_6 = arith.constant 0 : index
    %c0_7 = arith.constant 0 : index
    %8 = vector.load %arg7[%c0_6, %c0_7] : memref<8x32xf32, #tpu.memory_space<vmem>>, vector<8x32xf32>
    tpu.vector_store %arg7[%c0_6, %c0_7], %7 {strides = array<i32>} : memref<8x32xf32, #tpu.memory_space<vmem>>, vector<8x32xf32>,
    %c0_i32_8 = arith.constant 0 : i32
    %9 = arith.cmpi eq, %arg2, %c0_i32_8 : i32
    %10 = arith.extui %9 : i1 to i32
    %c0_i32_9 = arith.constant 0 : i32
    %11 = arith.cmpi ne, %10, %c0_i32_9 : i32
    scf.if %11 {
      %c0_10 = arith.constant 0 : index
      %c0_11 = arith.constant 0 : index
      %12 = vector.load %arg7[%c0_10, %c0_11] : memref<8x32xf32, #tpu.memory_space<vmem>>, vector<8x32xf32>
      %c0_12 = arith.constant 0 : index
      %c0_13 = arith.constant 0 : index
      %13 = vector.load %arg5[%c0_12, %c0_13] : memref<1x32xf32, #tpu.memory_space<vmem>>, vector<1x32xf32>
      %14 = vector.broadcast %13 : vector<1x32xf32> to vector<8x32xf32>
      %15 = arith.addf %12, %14 : vector<8x32xf32>
      %c0_14 = arith.constant 0 : index
      %c0_15 = arith.constant 0 : index
      %16 = vector.load %arg6[%c0_14, %c0_15] : memref<8x32xf32, #tpu.memory_space<vmem>>, vector<8x32xf32>
      tpu.vector_store %arg6[%c0_14, %c0_15], %15 {strides = array<i32>} : memref<8x32xf32, #tpu.memory_space<vmem>>, vector<8x32xf32>,
    } else {
    }
    return
  }
  func.func @transform_0(%arg0: i32, %arg1: i32, %arg2: i32) -> (i32, i32) {
    %c0_i32 = arith.constant 0 : i32
    return %arg0, %arg2 : i32, i32
  }
  func.func @transform_1(%arg0: i32, %arg1: i32, %arg2: i32) -> (i32, i32) {
    %c0_i32 = arith.constant 0 : i32
    return %arg2, %arg1 : i32, i32
  }
  func.func @transform_2(%arg0: i32, %arg1: i32, %arg2: i32) -> (i32, i32) {
    %c0_i32 = arith.constant 0 : i32
    %c0_i32_0 = arith.constant 0 : i32
    return %c0_i32, %arg1 : i32, i32
  }
  func.func @transform_3(%arg0: i32, %arg1: i32, %arg2: i32) -> (i32, i32) {
    %c0_i32 = arith.constant 0 : i32
    return %arg0, %arg1 : i32, i32
  }
}

module attributes {stable_mosaic.version = 11 : i64} {
  func.func @_linear_kernel(%arg0: i32, %arg1: i32, %arg2: i32, %arg3: memref<10x32xbf16, #tpu.memory_space<vmem>>, %arg4: memref<32x32xbf16, #tpu.memory_space<vmem>>, %arg5: memref<1x32xf32, #tpu.memory_space<vmem>>, %arg6: memref<10x32xf32, #tpu.memory_space<vmem>>, %arg7: memref<10x32xf32, #tpu.memory_space<vmem>>, %arg8: memref<10x32xf32, #tpu.memory_space<vmem>>) attributes {dimension_semantics = [#tpu.dimension_semantics<parallel>, #tpu.dimension_semantics<parallel>, #tpu.dimension_semantics<arbitrary>], iteration_bounds = array<i64: 1, 1, 1>, scalar_prefetch = 0 : i64, scratch_operands = 1 : i64, tpu.core_type = #tpu.core_type<tc>, window_params = [{transform_indices = @transform_0, window_bounds = array<i64: 10, 32>}, {transform_indices = @transform_1, window_bounds = array<i64: 32, 32>}, {transform_indices = @transform_2, window_bounds = array<i64: 1, 32>}, {transform_indices = @transform_3, window_bounds = array<i64: 10, 32>}, {transform_indices = @transform_4, window_bounds = array<i64: 10, 32>}]} {
    %c0_i32 = arith.constant 0 : i32
    %0 = arith.cmpi eq, %arg2, %c0_i32 : i32
    %1 = arith.extui %0 : i1 to i32
    %c0_i32_0 = arith.constant 0 : i32
    %2 = arith.cmpi ne, %1, %c0_i32_0 : i32
    scf.if %2 {
      %cst_10 = arith.constant 0.000000e+00 : f32
      %12 = vector.broadcast %cst_10 : f32 to vector<10x32xf32>
      %c0_11 = arith.constant 0 : index
      %c0_12 = arith.constant 0 : index
      %13 = vector.load %arg8[%c0_11, %c0_12] : memref<10x32xf32, #tpu.memory_space<vmem>>, vector<10x32xf32>
      tpu.vector_store %arg8[%c0_11, %c0_12], %12 {strides = array<i32>} : memref<10x32xf32, #tpu.memory_space<vmem>>, vector<10x32xf32>,
    } else {
    }
    %c0 = arith.constant 0 : index
    %c0_1 = arith.constant 0 : index
    %3 = vector.load %arg8[%c0, %c0_1] : memref<10x32xf32, #tpu.memory_space<vmem>>, vector<10x32xf32>
    %c0_2 = arith.constant 0 : index
    %c0_3 = arith.constant 0 : index
    %4 = vector.load %arg3[%c0_2, %c0_3] : memref<10x32xbf16, #tpu.memory_space<vmem>>, vector<10x32xbf16>
    %c0_4 = arith.constant 0 : index
    %c0_5 = arith.constant 0 : index
    %5 = vector.load %arg4[%c0_4, %c0_5] : memref<32x32xbf16, #tpu.memory_space<vmem>>, vector<32x32xbf16>
    %cst = arith.constant dense<0.000000e+00> : vector<10x32xf32>
    %6 = tpu.matmul %4, %5, %cst {dimension_numbers = #tpu.dot_dimension_numbers<[1], [0], [0], [1], [0, 0, 1, 1], [], []>} : vector<10x32xbf16>, vector<32x32xbf16>, vector<10x32xf32> -> vector<10x32xf32>
    %7 = arith.addf %3, %6 : vector<10x32xf32>
    %c0_6 = arith.constant 0 : index
    %c0_7 = arith.constant 0 : index
    %8 = vector.load %arg8[%c0_6, %c0_7] : memref<10x32xf32, #tpu.memory_space<vmem>>, vector<10x32xf32>
    tpu.vector_store %arg8[%c0_6, %c0_7], %7 {strides = array<i32>} : memref<10x32xf32, #tpu.memory_space<vmem>>, vector<10x32xf32>,
    %c0_i32_8 = arith.constant 0 : i32
    %9 = arith.cmpi eq, %arg2, %c0_i32_8 : i32
    %10 = arith.extui %9 : i1 to i32
    %c0_i32_9 = arith.constant 0 : i32
    %11 = arith.cmpi ne, %10, %c0_i32_9 : i32
    scf.if %11 {
      %c0_10 = arith.constant 0 : index
      %c0_11 = arith.constant 0 : index
      %12 = vector.load %arg8[%c0_10, %c0_11] : memref<10x32xf32, #tpu.memory_space<vmem>>, vector<10x32xf32>
      %c0_12 = arith.constant 0 : index
      %c0_13 = arith.constant 0 : index
      %13 = vector.load %arg5[%c0_12, %c0_13] : memref<1x32xf32, #tpu.memory_space<vmem>>, vector<1x32xf32>
      %14 = vector.broadcast %13 : vector<1x32xf32> to vector<10x32xf32>
      %15 = arith.addf %12, %14 : vector<10x32xf32>
      %c0_14 = arith.constant 0 : index
      %c0_15 = arith.constant 0 : index
      %16 = vector.load %arg6[%c0_14, %c0_15] : memref<10x32xf32, #tpu.memory_space<vmem>>, vector<10x32xf32>
      %17 = arith.addf %15, %16 : vector<10x32xf32>
      %c0_16 = arith.constant 0 : index
      %c0_17 = arith.constant 0 : index
      %18 = vector.load %arg7[%c0_16, %c0_17] : memref<10x32xf32, #tpu.memory_space<vmem>>, vector<10x32xf32>
      tpu.vector_store %arg7[%c0_16, %c0_17], %17 {strides = array<i32>} : memref<10x32xf32, #tpu.memory_space<vmem>>, vector<10x32xf32>,
    } else {
    }
    return
  }
  func.func @transform_0(%arg0: i32, %arg1: i32, %arg2: i32) -> (i32, i32) {
    %c0_i32 = arith.constant 0 : i32
    return %arg0, %arg2 : i32, i32
  }
  func.func @transform_1(%arg0: i32, %arg1: i32, %arg2: i32) -> (i32, i32) {
    %c0_i32 = arith.constant 0 : i32
    return %arg2, %arg1 : i32, i32
  }
  func.func @transform_2(%arg0: i32, %arg1: i32, %arg2: i32) -> (i32, i32) {
    %c0_i32 = arith.constant 0 : i32
    %c0_i32_0 = arith.constant 0 : i32
    return %c0_i32, %arg1 : i32, i32
  }
  func.func @transform_3(%arg0: i32, %arg1: i32, %arg2: i32) -> (i32, i32) {
    %c0_i32 = arith.constant 0 : i32
    return %arg0, %arg1 : i32, i32
  }
  func.func @transform_4(%arg0: i32, %arg1: i32, %arg2: i32) -> (i32, i32) {
    %c0_i32 = arith.constant 0 : i32
    return %arg0, %arg1 : i32, i32
  }
}

module attributes {stable_mosaic.version = 11 : i64} {
  func.func @_attention_kernel(%arg0: i32, %arg1: memref<1x5x96xbf16, #tpu.memory_space<vmem>>, %arg2: memref<1x5x32xbf16, #tpu.memory_space<vmem>>) attributes {dimension_semantics = [#tpu.dimension_semantics<parallel>], iteration_bounds = array<i64: 2>, scalar_prefetch = 0 : i64, scratch_operands = 0 : i64, tpu.core_type = #tpu.core_type<tc>, window_params = [{transform_indices = @transform_0, window_bounds = array<i64: 1, 5, 96>}, {transform_indices = @transform_1, window_bounds = array<i64: 1, 5, 32>}]} {
    %c0 = arith.constant 0 : index
    %c0_0 = arith.constant 0 : index
    %c0_1 = arith.constant 0 : index
    %0 = vector.load %arg1[%c0, %c0_0, %c0_1] : memref<1x5x96xbf16, #tpu.memory_space<vmem>>, vector<1x5x96xbf16>
    %1 = vector.shape_cast %0 : vector<1x5x96xbf16> to vector<5x96xbf16>
    %2 = vector.extract_strided_slice %1 {offsets = [0, 0], sizes = [5, 8], strides = [1, 1]} : vector<5x96xbf16> to vector<5x8xbf16>
    %3 = vector.extract_strided_slice %1 {offsets = [0, 32], sizes = [5, 8], strides = [1, 1]} : vector<5x96xbf16> to vector<5x8xbf16>
    %4 = vector.extract_strided_slice %1 {offsets = [0, 64], sizes = [5, 8], strides = [1, 1]} : vector<5x96xbf16> to vector<5x8xbf16>
    %cst = arith.constant dense<0.000000e+00> : vector<5x5xf32>
    %5 = tpu.matmul %2, %3, %cst {dimension_numbers = #tpu.dot_dimension_numbers<[1], [1], [0], [0], [0, 0, 1, 0], [], []>} : vector<5x8xbf16>, vector<5x8xbf16>, vector<5x5xf32> -> vector<5x5xf32>
    %cst_2 = arith.constant 0.353553385 : f32
    %6 = vector.broadcast %cst_2 : f32 to vector<5x5xf32>
    %7 = arith.mulf %5, %6 : vector<5x5xf32>
    %cst_3 = arith.constant dense<0xFF800000> : vector<5xf32>
    %8 = vector.multi_reduction <maximumf>, %7, %cst_3 [1] : vector<5x5xf32> to vector<5xf32>
    %9 = vector.shape_cast %8 : vector<5xf32> to vector<5x1xf32>
    %10 = vector.broadcast %9 : vector<5x1xf32> to vector<5x5xf32>
    %11 = arith.subf %7, %10 : vector<5x5xf32>
    %12 = math.exp %11 : vector<5x5xf32>
    %cst_4 = arith.constant dense<0.000000e+00> : vector<5xf32>
    %13 = vector.multi_reduction <add>, %12, %cst_4 [1] : vector<5x5xf32> to vector<5xf32>
    %14 = vector.shape_cast %13 : vector<5xf32> to vector<5x1xf32>
    %15 = tpu.reciprocal %14 {approx = true} : vector<5x1xf32> -> vector<5x1xf32>
    %16 = vector.broadcast %15 : vector<5x1xf32> to vector<5x5xf32>
    %17 = arith.mulf %12, %16 : vector<5x5xf32>
    %18 = arith.truncf %17 : vector<5x5xf32> to vector<5x5xbf16>
    %cst_5 = arith.constant dense<0.000000e+00> : vector<5x8xf32>
    %19 = tpu.matmul %18, %4, %cst_5 {dimension_numbers = #tpu.dot_dimension_numbers<[1], [0], [0], [1], [0, 0, 1, 1], [], []>} : vector<5x5xbf16>, vector<5x8xbf16>, vector<5x8xf32> -> vector<5x8xf32>
    %20 = vector.extract_strided_slice %1 {offsets = [0, 8], sizes = [5, 8], strides = [1, 1]} : vector<5x96xbf16> to vector<5x8xbf16>
    %21 = vector.extract_strided_slice %1 {offsets = [0, 40], sizes = [5, 8], strides = [1, 1]} : vector<5x96xbf16> to vector<5x8xbf16>
    %22 = vector.extract_strided_slice %1 {offsets = [0, 72], sizes = [5, 8], strides = [1, 1]} : vector<5x96xbf16> to vector<5x8xbf16>
    %cst_6 = arith.constant dense<0.000000e+00> : vector<5x5xf32>
    %23 = tpu.matmul %20, %21, %cst_6 {dimension_numbers = #tpu.dot_dimension_numbers<[1], [1], [0], [0], [0, 0, 1, 0], [], []>} : vector<5x8xbf16>, vector<5x8xbf16>, vector<5x5xf32> -> vector<5x5xf32>
    %cst_7 = arith.constant 0.353553385 : f32
    %24 = vector.broadcast %cst_7 : f32 to vector<5x5xf32>
    %25 = arith.mulf %23, %24 : vector<5x5xf32>
    %cst_8 = arith.constant dense<0xFF800000> : vector<5xf32>
    %26 = vector.multi_reduction <maximumf>, %25, %cst_8 [1] : vector<5x5xf32> to vector<5xf32>
    %27 = vector.shape_cast %26 : vector<5xf32> to vector<5x1xf32>
    %28 = vector.broadcast %27 : vector<5x1xf32> to vector<5x5xf32>
    %29 = arith.subf %25, %28 : vector<5x5xf32>
    %30 = math.exp %29 : vector<5x5xf32>
    %cst_9 = arith.constant dense<0.000000e+00> : vector<5xf32>
    %31 = vector.multi_reduction <add>, %30, %cst_9 [1] : vector<5x5xf32> to vector<5xf32>
    %32 = vector.shape_cast %31 : vector<5xf32> to vector<5x1xf32>
    %33 = tpu.reciprocal %32 {approx = true} : vector<5x1xf32> -> vector<5x1xf32>
    %34 = vector.broadcast %33 : vector<5x1xf32> to vector<5x5xf32>
    %35 = arith.mulf %30, %34 : vector<5x5xf32>
    %36 = arith.truncf %35 : vector<5x5xf32> to vector<5x5xbf16>
    %cst_10 = arith.constant dense<0.000000e+00> : vector<5x8xf32>
    %37 = tpu.matmul %36, %22, %cst_10 {dimension_numbers = #tpu.dot_dimension_numbers<[1], [0], [0], [1], [0, 0, 1, 1], [], []>} : vector<5x5xbf16>, vector<5x8xbf16>, vector<5x8xf32> -> vector<5x8xf32>
    %38 = vector.extract_strided_slice %1 {offsets = [0, 16], sizes = [5, 8], strides = [1, 1]} : vector<5x96xbf16> to vector<5x8xbf16>
    %39 = vector.extract_strided_slice %1 {offsets = [0, 48], sizes = [5, 8], strides = [1, 1]} : vector<5x96xbf16> to vector<5x8xbf16>
    %40 = vector.extract_strided_slice %1 {offsets = [0, 80], sizes = [5, 8], strides = [1, 1]} : vector<5x96xbf16> to vector<5x8xbf16>
    %cst_11 = arith.constant dense<0.000000e+00> : vector<5x5xf32>
    %41 = tpu.matmul %38, %39, %cst_11 {dimension_numbers = #tpu.dot_dimension_numbers<[1], [1], [0], [0], [0, 0, 1, 0], [], []>} : vector<5x8xbf16>, vector<5x8xbf16>, vector<5x5xf32> -> vector<5x5xf32>
    %cst_12 = arith.constant 0.353553385 : f32
    %42 = vector.broadcast %cst_12 : f32 to vector<5x5xf32>
    %43 = arith.mulf %41, %42 : vector<5x5xf32>
    %cst_13 = arith.constant dense<0xFF800000> : vector<5xf32>
    %44 = vector.multi_reduction <maximumf>, %43, %cst_13 [1] : vector<5x5xf32> to vector<5xf32>
    %45 = vector.shape_cast %44 : vector<5xf32> to vector<5x1xf32>
    %46 = vector.broadcast %45 : vector<5x1xf32> to vector<5x5xf32>
    %47 = arith.subf %43, %46 : vector<5x5xf32>
    %48 = math.exp %47 : vector<5x5xf32>
    %cst_14 = arith.constant dense<0.000000e+00> : vector<5xf32>
    %49 = vector.multi_reduction <add>, %48, %cst_14 [1] : vector<5x5xf32> to vector<5xf32>
    %50 = vector.shape_cast %49 : vector<5xf32> to vector<5x1xf32>
    %51 = tpu.reciprocal %50 {approx = true} : vector<5x1xf32> -> vector<5x1xf32>
    %52 = vector.broadcast %51 : vector<5x1xf32> to vector<5x5xf32>
    %53 = arith.mulf %48, %52 : vector<5x5xf32>
    %54 = arith.truncf %53 : vector<5x5xf32> to vector<5x5xbf16>
    %cst_15 = arith.constant dense<0.000000e+00> : vector<5x8xf32>
    %55 = tpu.matmul %54, %40, %cst_15 {dimension_numbers = #tpu.dot_dimension_numbers<[1], [0], [0], [1], [0, 0, 1, 1], [], []>} : vector<5x5xbf16>, vector<5x8xbf16>, vector<5x8xf32> -> vector<5x8xf32>
    %56 = vector.extract_strided_slice %1 {offsets = [0, 24], sizes = [5, 8], strides = [1, 1]} : vector<5x96xbf16> to vector<5x8xbf16>
    %57 = vector.extract_strided_slice %1 {offsets = [0, 56], sizes = [5, 8], strides = [1, 1]} : vector<5x96xbf16> to vector<5x8xbf16>
    %58 = vector.extract_strided_slice %1 {offsets = [0, 88], sizes = [5, 8], strides = [1, 1]} : vector<5x96xbf16> to vector<5x8xbf16>
    %cst_16 = arith.constant dense<0.000000e+00> : vector<5x5xf32>
    %59 = tpu.matmul %56, %57, %cst_16 {dimension_numbers = #tpu.dot_dimension_numbers<[1], [1], [0], [0], [0, 0, 1, 0], [], []>} : vector<5x8xbf16>, vector<5x8xbf16>, vector<5x5xf32> -> vector<5x5xf32>
    %cst_17 = arith.constant 0.353553385 : f32
    %60 = vector.broadcast %cst_17 : f32 to vector<5x5xf32>
    %61 = arith.mulf %59, %60 : vector<5x5xf32>
    %cst_18 = arith.constant dense<0xFF800000> : vector<5xf32>
    %62 = vector.multi_reduction <maximumf>, %61, %cst_18 [1] : vector<5x5xf32> to vector<5xf32>
    %63 = vector.shape_cast %62 : vector<5xf32> to vector<5x1xf32>
    %64 = vector.broadcast %63 : vector<5x1xf32> to vector<5x5xf32>
    %65 = arith.subf %61, %64 : vector<5x5xf32>
    %66 = math.exp %65 : vector<5x5xf32>
    %cst_19 = arith.constant dense<0.000000e+00> : vector<5xf32>
    %67 = vector.multi_reduction <add>, %66, %cst_19 [1] : vector<5x5xf32> to vector<5xf32>
    %68 = vector.shape_cast %67 : vector<5xf32> to vector<5x1xf32>
    %69 = tpu.reciprocal %68 {approx = true} : vector<5x1xf32> -> vector<5x1xf32>
    %70 = vector.broadcast %69 : vector<5x1xf32> to vector<5x5xf32>
    %71 = arith.mulf %66, %70 : vector<5x5xf32>
    %72 = arith.truncf %71 : vector<5x5xf32> to vector<5x5xbf16>
    %cst_20 = arith.constant dense<0.000000e+00> : vector<5x8xf32>
    %73 = tpu.matmul %72, %58, %cst_20 {dimension_numbers = #tpu.dot_dimension_numbers<[1], [0], [0], [1], [0, 0, 1, 1], [], []>} : vector<5x5xbf16>, vector<5x8xbf16>, vector<5x8xf32> -> vector<5x8xf32>
    %74 = tpu.concatenate %19, %37, %55, %73 in 1 : vector<5x8xf32>, vector<5x8xf32>, vector<5x8xf32>, vector<5x8xf32> -> vector<5x32xf32>
    %75 = arith.truncf %74 : vector<5x32xf32> to vector<5x32xbf16>
    %c0_21 = arith.constant 0 : index
    %c0_22 = arith.constant 0 : index
    %c0_23 = arith.constant 0 : index
    %76 = vector.load %arg2[%c0_21, %c0_22, %c0_23] : memref<1x5x32xbf16, #tpu.memory_space<vmem>>, vector<1x5x32xbf16>
    %77 = vector.shape_cast %76 : vector<1x5x32xbf16> to vector<5x32xbf16>
    %78 = vector.shape_cast %75 : vector<5x32xbf16> to vector<1x5x32xbf16>
    tpu.vector_store %arg2[%c0_21, %c0_22, %c0_23], %78 {strides = array<i32>} : memref<1x5x32xbf16, #tpu.memory_space<vmem>>, vector<1x5x32xbf16>,
    return
  }
  func.func @transform_0(%arg0: i32) -> (i32, i32, i32) {
    %c0_i32 = arith.constant 0 : i32
    %c0_i32_0 = arith.constant 0 : i32
    %c0_i32_1 = arith.constant 0 : i32
    return %arg0, %c0_i32, %c0_i32_0 : i32, i32, i32
  }
  func.func @transform_1(%arg0: i32) -> (i32, i32, i32) {
    %c0_i32 = arith.constant 0 : i32
    %c0_i32_0 = arith.constant 0 : i32
    %c0_i32_1 = arith.constant 0 : i32
    return %arg0, %c0_i32, %c0_i32_0 : i32, i32, i32
  }
}

module attributes {stable_mosaic.version = 11 : i64} {
  func.func @_ln_linear_kernel(%arg0: i32, %arg1: i32, %arg2: memref<10x32xf32, #tpu.memory_space<vmem>>, %arg3: memref<1x32xf32, #tpu.memory_space<vmem>>, %arg4: memref<1x32xf32, #tpu.memory_space<vmem>>, %arg5: memref<32x96xbf16, #tpu.memory_space<vmem>>, %arg6: memref<1x96xf32, #tpu.memory_space<vmem>>, %arg7: memref<10x96xbf16, #tpu.memory_space<vmem>>) attributes {dimension_semantics = [#tpu.dimension_semantics<parallel>, #tpu.dimension_semantics<parallel>], iteration_bounds = array<i64: 1, 1>, scalar_prefetch = 0 : i64, scratch_operands = 0 : i64, tpu.core_type = #tpu.core_type<tc>, window_params = [{transform_indices = @transform_0, window_bounds = array<i64: 10, 32>}, {pipeline_mode = #tpu.pipeline_mode<synchronous>, transform_indices = @transform_1, window_bounds = array<i64: 1, 32>}, {pipeline_mode = #tpu.pipeline_mode<synchronous>, transform_indices = @transform_2, window_bounds = array<i64: 1, 32>}, {transform_indices = @transform_3, window_bounds = array<i64: 32, 96>}, {transform_indices = @transform_4, window_bounds = array<i64: 1, 96>}, {transform_indices = @transform_5, window_bounds = array<i64: 10, 96>}]} {
    %c0 = arith.constant 0 : index
    %c0_0 = arith.constant 0 : index
    %0 = vector.load %arg2[%c0, %c0_0] : memref<10x32xf32, #tpu.memory_space<vmem>>, vector<10x32xf32>
    %cst = arith.constant dense<0.000000e+00> : vector<10xf32>
    %1 = vector.multi_reduction <add>, %0, %cst [1] : vector<10x32xf32> to vector<10xf32>
    %2 = vector.shape_cast %1 : vector<10xf32> to vector<10x1xf32>
    %cst_1 = arith.constant 3.200000e+01 : f32
    %3 = vector.broadcast %cst_1 : f32 to vector<10x1xf32>
    %4 = arith.divf %2, %3 : vector<10x1xf32>
    %5 = vector.broadcast %4 : vector<10x1xf32> to vector<10x32xf32>
    %6 = arith.subf %0, %5 : vector<10x32xf32>
    %7 = arith.mulf %6, %6 : vector<10x32xf32>
    %cst_2 = arith.constant dense<0.000000e+00> : vector<10xf32>
    %8 = vector.multi_reduction <add>, %7, %cst_2 [1] : vector<10x32xf32> to vector<10xf32>
    %9 = vector.shape_cast %8 : vector<10xf32> to vector<10x1xf32>
    %cst_3 = arith.constant 3.200000e+01 : f32
    %10 = vector.broadcast %cst_3 : f32 to vector<10x1xf32>
    %11 = arith.divf %9, %10 : vector<10x1xf32>
    %cst_4 = arith.constant 9.99999974E-6 : f32
    %12 = vector.broadcast %cst_4 : f32 to vector<10x1xf32>
    %13 = arith.addf %11, %12 : vector<10x1xf32>
    %14 = math.rsqrt %13 : vector<10x1xf32>
    %15 = vector.broadcast %14 : vector<10x1xf32> to vector<10x32xf32>
    %16 = arith.mulf %6, %15 : vector<10x32xf32>
    %c0_5 = arith.constant 0 : index
    %c0_6 = arith.constant 0 : index
    %17 = vector.load %arg3[%c0_5, %c0_6] : memref<1x32xf32, #tpu.memory_space<vmem>>, vector<1x32xf32>
    %18 = vector.broadcast %17 : vector<1x32xf32> to vector<10x32xf32>
    %19 = arith.mulf %16, %18 : vector<10x32xf32>
    %c0_7 = arith.constant 0 : index
    %c0_8 = arith.constant 0 : index
    %20 = vector.load %arg4[%c0_7, %c0_8] : memref<1x32xf32, #tpu.memory_space<vmem>>, vector<1x32xf32>
    %21 = vector.broadcast %20 : vector<1x32xf32> to vector<10x32xf32>
    %22 = arith.addf %19, %21 : vector<10x32xf32>
    %23 = arith.truncf %22 : vector<10x32xf32> to vector<10x32xbf16>
    %c0_9 = arith.constant 0 : index
    %c0_10 = arith.constant 0 : index
    %24 = vector.load %arg5[%c0_9, %c0_10] : memref<32x96xbf16, #tpu.memory_space<vmem>>, vector<32x96xbf16>
    %cst_11 = arith.constant dense<0.000000e+00> : vector<10x96xf32>
    %25 = tpu.matmul %23, %24, %cst_11 {dimension_numbers = #tpu.dot_dimension_numbers<[1], [0], [0], [1], [0, 0, 1, 1], [], []>} : vector<10x32xbf16>, vector<32x96xbf16>, vector<10x96xf32> -> vector<10x96xf32>
    %c0_12 = arith.constant 0 : index
    %c0_13 = arith.constant 0 : index
    %26 = vector.load %arg6[%c0_12, %c0_13] : memref<1x96xf32, #tpu.memory_space<vmem>>, vector<1x96xf32>
    %27 = vector.broadcast %26 : vector<1x96xf32> to vector<10x96xf32>
    %28 = arith.addf %25, %27 : vector<10x96xf32>
    %29 = arith.truncf %28 : vector<10x96xf32> to vector<10x96xbf16>
    %c0_14 = arith.constant 0 : index
    %c0_15 = arith.constant 0 : index
    %30 = vector.load %arg7[%c0_14, %c0_15] : memref<10x96xbf16, #tpu.memory_space<vmem>>, vector<10x96xbf16>
    tpu.vector_store %arg7[%c0_14, %c0_15], %29 {strides = array<i32>} : memref<10x96xbf16, #tpu.memory_space<vmem>>, vector<10x96xbf16>,
    return
  }
  func.func @transform_0(%arg0: i32, %arg1: i32) -> (i32, i32) {
    %c0_i32 = arith.constant 0 : i32
    %c0_i32_0 = arith.constant 0 : i32
    return %arg0, %c0_i32 : i32, i32
  }
  func.func @transform_1(%arg0: i32, %arg1: i32) -> (i32, i32) {
    %c0_i32 = arith.constant 0 : i32
    %c0_i32_0 = arith.constant 0 : i32
    %c0_i32_1 = arith.constant 0 : i32
    return %c0_i32, %c0_i32_0 : i32, i32
  }
  func.func @transform_2(%arg0: i32, %arg1: i32) -> (i32, i32) {
    %c0_i32 = arith.constant 0 : i32
    %c0_i32_0 = arith.constant 0 : i32
    %c0_i32_1 = arith.constant 0 : i32
    return %c0_i32, %c0_i32_0 : i32, i32
  }
  func.func @transform_3(%arg0: i32, %arg1: i32) -> (i32, i32) {
    %c0_i32 = arith.constant 0 : i32
    %c0_i32_0 = arith.constant 0 : i32
    return %c0_i32, %arg1 : i32, i32
  }
  func.func @transform_4(%arg0: i32, %arg1: i32) -> (i32, i32) {
    %c0_i32 = arith.constant 0 : i32
    %c0_i32_0 = arith.constant 0 : i32
    return %c0_i32, %arg1 : i32, i32
  }
  func.func @transform_5(%arg0: i32, %arg1: i32) -> (i32, i32) {
    %c0_i32 = arith.constant 0 : i32
    return %arg0, %arg1 : i32, i32
  }
}

module attributes {stable_mosaic.version = 11 : i64} {
  func.func @_ln_linear_kernel(%arg0: i32, %arg1: i32, %arg2: memref<10x32xf32, #tpu.memory_space<vmem>>, %arg3: memref<1x32xf32, #tpu.memory_space<vmem>>, %arg4: memref<1x32xf32, #tpu.memory_space<vmem>>, %arg5: memref<32x128xbf16, #tpu.memory_space<vmem>>, %arg6: memref<1x128xf32, #tpu.memory_space<vmem>>, %arg7: memref<10x128xbf16, #tpu.memory_space<vmem>>) attributes {dimension_semantics = [#tpu.dimension_semantics<parallel>, #tpu.dimension_semantics<parallel>], iteration_bounds = array<i64: 1, 1>, scalar_prefetch = 0 : i64, scratch_operands = 0 : i64, tpu.core_type = #tpu.core_type<tc>, window_params = [{transform_indices = @transform_0, window_bounds = array<i64: 10, 32>}, {pipeline_mode = #tpu.pipeline_mode<synchronous>, transform_indices = @transform_1, window_bounds = array<i64: 1, 32>}, {pipeline_mode = #tpu.pipeline_mode<synchronous>, transform_indices = @transform_2, window_bounds = array<i64: 1, 32>}, {transform_indices = @transform_3, window_bounds = array<i64: 32, 128>}, {transform_indices = @transform_4, window_bounds = array<i64: 1, 128>}, {transform_indices = @transform_5, window_bounds = array<i64: 10, 128>}]} {
    %c0 = arith.constant 0 : index
    %c0_0 = arith.constant 0 : index
    %0 = vector.load %arg2[%c0, %c0_0] : memref<10x32xf32, #tpu.memory_space<vmem>>, vector<10x32xf32>
    %cst = arith.constant dense<0.000000e+00> : vector<10xf32>
    %1 = vector.multi_reduction <add>, %0, %cst [1] : vector<10x32xf32> to vector<10xf32>
    %2 = vector.shape_cast %1 : vector<10xf32> to vector<10x1xf32>
    %cst_1 = arith.constant 3.200000e+01 : f32
    %3 = vector.broadcast %cst_1 : f32 to vector<10x1xf32>
    %4 = arith.divf %2, %3 : vector<10x1xf32>
    %5 = vector.broadcast %4 : vector<10x1xf32> to vector<10x32xf32>
    %6 = arith.subf %0, %5 : vector<10x32xf32>
    %7 = arith.mulf %6, %6 : vector<10x32xf32>
    %cst_2 = arith.constant dense<0.000000e+00> : vector<10xf32>
    %8 = vector.multi_reduction <add>, %7, %cst_2 [1] : vector<10x32xf32> to vector<10xf32>
    %9 = vector.shape_cast %8 : vector<10xf32> to vector<10x1xf32>
    %cst_3 = arith.constant 3.200000e+01 : f32
    %10 = vector.broadcast %cst_3 : f32 to vector<10x1xf32>
    %11 = arith.divf %9, %10 : vector<10x1xf32>
    %cst_4 = arith.constant 9.99999974E-6 : f32
    %12 = vector.broadcast %cst_4 : f32 to vector<10x1xf32>
    %13 = arith.addf %11, %12 : vector<10x1xf32>
    %14 = math.rsqrt %13 : vector<10x1xf32>
    %15 = vector.broadcast %14 : vector<10x1xf32> to vector<10x32xf32>
    %16 = arith.mulf %6, %15 : vector<10x32xf32>
    %c0_5 = arith.constant 0 : index
    %c0_6 = arith.constant 0 : index
    %17 = vector.load %arg3[%c0_5, %c0_6] : memref<1x32xf32, #tpu.memory_space<vmem>>, vector<1x32xf32>
    %18 = vector.broadcast %17 : vector<1x32xf32> to vector<10x32xf32>
    %19 = arith.mulf %16, %18 : vector<10x32xf32>
    %c0_7 = arith.constant 0 : index
    %c0_8 = arith.constant 0 : index
    %20 = vector.load %arg4[%c0_7, %c0_8] : memref<1x32xf32, #tpu.memory_space<vmem>>, vector<1x32xf32>
    %21 = vector.broadcast %20 : vector<1x32xf32> to vector<10x32xf32>
    %22 = arith.addf %19, %21 : vector<10x32xf32>
    %23 = arith.truncf %22 : vector<10x32xf32> to vector<10x32xbf16>
    %c0_9 = arith.constant 0 : index
    %c0_10 = arith.constant 0 : index
    %24 = vector.load %arg5[%c0_9, %c0_10] : memref<32x128xbf16, #tpu.memory_space<vmem>>, vector<32x128xbf16>
    %cst_11 = arith.constant dense<0.000000e+00> : vector<10x128xf32>
    %25 = tpu.matmul %23, %24, %cst_11 {dimension_numbers = #tpu.dot_dimension_numbers<[1], [0], [0], [1], [0, 0, 1, 1], [], []>} : vector<10x32xbf16>, vector<32x128xbf16>, vector<10x128xf32> -> vector<10x128xf32>
    %c0_12 = arith.constant 0 : index
    %c0_13 = arith.constant 0 : index
    %26 = vector.load %arg6[%c0_12, %c0_13] : memref<1x128xf32, #tpu.memory_space<vmem>>, vector<1x128xf32>
    %27 = vector.broadcast %26 : vector<1x128xf32> to vector<10x128xf32>
    %28 = arith.addf %25, %27 : vector<10x128xf32>
    %cst_14 = arith.constant 5.000000e-01 : f32
    %29 = vector.broadcast %cst_14 : f32 to vector<10x128xf32>
    %30 = arith.mulf %29, %28 : vector<10x128xf32>
    %cst_15 = arith.constant 0.707106769 : f32
    %31 = vector.broadcast %cst_15 : f32 to vector<10x128xf32>
    %32 = arith.mulf %28, %31 : vector<10x128xf32>
    %33 = math.absf %32 : vector<10x128xf32>
    %cst_16 = arith.constant 0.327591091 : f32
    %34 = vector.broadcast %cst_16 : f32 to vector<10x128xf32>
    %35 = arith.mulf %34, %33 : vector<10x128xf32>
    %cst_17 = arith.constant 1.000000e+00 : f32
    %36 = vector.broadcast %cst_17 : f32 to vector<10x128xf32>
    %37 = arith.addf %36, %35 : vector<10x128xf32>
    %cst_18 = arith.constant 1.000000e+00 : f32
    %38 = vector.broadcast %cst_18 : f32 to vector<10x128xf32>
    %39 = arith.divf %38, %37 : vector<10x128xf32>
    %cst_19 = arith.constant 1.06140542 : f32
    %40 = vector.broadcast %cst_19 : f32 to vector<10x128xf32>
    %41 = arith.mulf %39, %40 : vector<10x128xf32>
    %cst_20 = arith.constant -1.45315206 : f32
    %42 = vector.broadcast %cst_20 : f32 to vector<10x128xf32>
    %43 = arith.addf %42, %41 : vector<10x128xf32>
    %44 = arith.mulf %39, %43 : vector<10x128xf32>
    %cst_21 = arith.constant 1.42141378 : f32
    %45 = vector.broadcast %cst_21 : f32 to vector<10x128xf32>
    %46 = arith.addf %45, %44 : vector<10x128xf32>
    %47 = arith.mulf %39, %46 : vector<10x128xf32>
    %cst_22 = arith.constant -0.284496725 : f32
    %48 = vector.broadcast %cst_22 : f32 to vector<10x128xf32>
    %49 = arith.addf %48, %47 : vector<10x128xf32>
    %50 = arith.mulf %39, %49 : vector<10x128xf32>
    %cst_23 = arith.constant 0.254829586 : f32
    %51 = vector.broadcast %cst_23 : f32 to vector<10x128xf32>
    %52 = arith.addf %51, %50 : vector<10x128xf32>
    %53 = arith.mulf %39, %52 : vector<10x128xf32>
    %cst_24 = arith.constant 0.000000e+00 : f32
    %54 = vector.broadcast %cst_24 : f32 to vector<10x128xf32>
    %55 = arith.subf %54, %33 : vector<10x128xf32>
    %56 = arith.mulf %55, %33 : vector<10x128xf32>
    %57 = math.exp %56 : vector<10x128xf32>
    %58 = arith.mulf %53, %57 : vector<10x128xf32>
    %cst_25 = arith.constant 1.000000e+00 : f32
    %59 = vector.broadcast %cst_25 : f32 to vector<10x128xf32>
    %60 = arith.subf %59, %58 : vector<10x128xf32>
    %cst_26 = arith.constant 0.000000e+00 : f32
    %61 = vector.broadcast %cst_26 : f32 to vector<10x128xf32>
    %62 = arith.cmpf oge, %32, %61 : vector<10x128xf32>
    %cst_27 = arith.constant 0.000000e+00 : f32
    %63 = vector.broadcast %cst_27 : f32 to vector<10x128xf32>
    %64 = arith.subf %63, %60 : vector<10x128xf32>
    %65 = arith.select %62, %60, %64 : vector<10x128xi1>, vector<10x128xf32>
    %cst_28 = arith.constant 1.000000e+00 : f32
    %66 = vector.broadcast %cst_28 : f32 to vector<10x128xf32>
    %67 = arith.addf %66, %65 : vector<10x128xf32>
    %68 = arith.mulf %30, %67 : vector<10x128xf32>
    %69 = arith.truncf %68 : vector<10x128xf32> to vector<10x128xbf16>
    %c0_29 = arith.constant 0 : index
    %c0_30 = arith.constant 0 : index
    %70 = vector.load %arg7[%c0_29, %c0_30] : memref<10x128xbf16, #tpu.memory_space<vmem>>, vector<10x128xbf16>
    tpu.vector_store %arg7[%c0_29, %c0_30], %69 {strides = array<i32>} : memref<10x128xbf16, #tpu.memory_space<vmem>>, vector<10x128xbf16>,
    return
  }
  func.func @transform_0(%arg0: i32, %arg1: i32) -> (i32, i32) {
    %c0_i32 = arith.constant 0 : i32
    %c0_i32_0 = arith.constant 0 : i32
    return %arg0, %c0_i32 : i32, i32
  }
  func.func @transform_1(%arg0: i32, %arg1: i32) -> (i32, i32) {
    %c0_i32 = arith.constant 0 : i32
    %c0_i32_0 = arith.constant 0 : i32
    %c0_i32_1 = arith.constant 0 : i32
    return %c0_i32, %c0_i32_0 : i32, i32
  }
  func.func @transform_2(%arg0: i32, %arg1: i32) -> (i32, i32) {
    %c0_i32 = arith.constant 0 : i32
    %c0_i32_0 = arith.constant 0 : i32
    %c0_i32_1 = arith.constant 0 : i32
    return %c0_i32, %c0_i32_0 : i32, i32
  }
  func.func @transform_3(%arg0: i32, %arg1: i32) -> (i32, i32) {
    %c0_i32 = arith.constant 0 : i32
    %c0_i32_0 = arith.constant 0 : i32
    return %c0_i32, %arg1 : i32, i32
  }
  func.func @transform_4(%arg0: i32, %arg1: i32) -> (i32, i32) {
    %c0_i32 = arith.constant 0 : i32
    %c0_i32_0 = arith.constant 0 : i32
    return %c0_i32, %arg1 : i32, i32
  }
  func.func @transform_5(%arg0: i32, %arg1: i32) -> (i32, i32) {
    %c0_i32 = arith.constant 0 : i32
    return %arg0, %arg1 : i32, i32
  }
}

module attributes {stable_mosaic.version = 11 : i64} {
  func.func @_linear_kernel(%arg0: i32, %arg1: i32, %arg2: i32, %arg3: memref<10x128xbf16, #tpu.memory_space<vmem>>, %arg4: memref<128x32xbf16, #tpu.memory_space<vmem>>, %arg5: memref<1x32xf32, #tpu.memory_space<vmem>>, %arg6: memref<10x32xf32, #tpu.memory_space<vmem>>, %arg7: memref<10x32xf32, #tpu.memory_space<vmem>>, %arg8: memref<10x32xf32, #tpu.memory_space<vmem>>) attributes {dimension_semantics = [#tpu.dimension_semantics<parallel>, #tpu.dimension_semantics<parallel>, #tpu.dimension_semantics<arbitrary>], iteration_bounds = array<i64: 1, 1, 1>, scalar_prefetch = 0 : i64, scratch_operands = 1 : i64, tpu.core_type = #tpu.core_type<tc>, window_params = [{transform_indices = @transform_0, window_bounds = array<i64: 10, 128>}, {transform_indices = @transform_1, window_bounds = array<i64: 128, 32>}, {transform_indices = @transform_2, window_bounds = array<i64: 1, 32>}, {transform_indices = @transform_3, window_bounds = array<i64: 10, 32>}, {transform_indices = @transform_4, window_bounds = array<i64: 10, 32>}]} {
    %c0_i32 = arith.constant 0 : i32
    %0 = arith.cmpi eq, %arg2, %c0_i32 : i32
    %1 = arith.extui %0 : i1 to i32
    %c0_i32_0 = arith.constant 0 : i32
    %2 = arith.cmpi ne, %1, %c0_i32_0 : i32
    scf.if %2 {
      %cst_10 = arith.constant 0.000000e+00 : f32
      %12 = vector.broadcast %cst_10 : f32 to vector<10x32xf32>
      %c0_11 = arith.constant 0 : index
      %c0_12 = arith.constant 0 : index
      %13 = vector.load %arg8[%c0_11, %c0_12] : memref<10x32xf32, #tpu.memory_space<vmem>>, vector<10x32xf32>
      tpu.vector_store %arg8[%c0_11, %c0_12], %12 {strides = array<i32>} : memref<10x32xf32, #tpu.memory_space<vmem>>, vector<10x32xf32>,
    } else {
    }
    %c0 = arith.constant 0 : index
    %c0_1 = arith.constant 0 : index
    %3 = vector.load %arg8[%c0, %c0_1] : memref<10x32xf32, #tpu.memory_space<vmem>>, vector<10x32xf32>
    %c0_2 = arith.constant 0 : index
    %c0_3 = arith.constant 0 : index
    %4 = vector.load %arg3[%c0_2, %c0_3] : memref<10x128xbf16, #tpu.memory_space<vmem>>, vector<10x128xbf16>
    %c0_4 = arith.constant 0 : index
    %c0_5 = arith.constant 0 : index
    %5 = vector.load %arg4[%c0_4, %c0_5] : memref<128x32xbf16, #tpu.memory_space<vmem>>, vector<128x32xbf16>
    %cst = arith.constant dense<0.000000e+00> : vector<10x32xf32>
    %6 = tpu.matmul %4, %5, %cst {dimension_numbers = #tpu.dot_dimension_numbers<[1], [0], [0], [1], [0, 0, 1, 1], [], []>} : vector<10x128xbf16>, vector<128x32xbf16>, vector<10x32xf32> -> vector<10x32xf32>
    %7 = arith.addf %3, %6 : vector<10x32xf32>
    %c0_6 = arith.constant 0 : index
    %c0_7 = arith.constant 0 : index
    %8 = vector.load %arg8[%c0_6, %c0_7] : memref<10x32xf32, #tpu.memory_space<vmem>>, vector<10x32xf32>
    tpu.vector_store %arg8[%c0_6, %c0_7], %7 {strides = array<i32>} : memref<10x32xf32, #tpu.memory_space<vmem>>, vector<10x32xf32>,
    %c0_i32_8 = arith.constant 0 : i32
    %9 = arith.cmpi eq, %arg2, %c0_i32_8 : i32
    %10 = arith.extui %9 : i1 to i32
    %c0_i32_9 = arith.constant 0 : i32
    %11 = arith.cmpi ne, %10, %c0_i32_9 : i32
    scf.if %11 {
      %c0_10 = arith.constant 0 : index
      %c0_11 = arith.constant 0 : index
      %12 = vector.load %arg8[%c0_10, %c0_11] : memref<10x32xf32, #tpu.memory_space<vmem>>, vector<10x32xf32>
      %c0_12 = arith.constant 0 : index
      %c0_13 = arith.constant 0 : index
      %13 = vector.load %arg5[%c0_12, %c0_13] : memref<1x32xf32, #tpu.memory_space<vmem>>, vector<1x32xf32>
      %14 = vector.broadcast %13 : vector<1x32xf32> to vector<10x32xf32>
      %15 = arith.addf %12, %14 : vector<10x32xf32>
      %c0_14 = arith.constant 0 : index
      %c0_15 = arith.constant 0 : index
      %16 = vector.load %arg6[%c0_14, %c0_15] : memref<10x32xf32, #tpu.memory_space<vmem>>, vector<10x32xf32>
      %17 = arith.addf %15, %16 : vector<10x32xf32>
      %c0_16 = arith.constant 0 : index
      %c0_17 = arith.constant 0 : index
      %18 = vector.load %arg7[%c0_16, %c0_17] : memref<10x32xf32, #tpu.memory_space<vmem>>, vector<10x32xf32>
      tpu.vector_store %arg7[%c0_16, %c0_17], %17 {strides = array<i32>} : memref<10x32xf32, #tpu.memory_space<vmem>>, vector<10x32xf32>,
    } else {
    }
    return
  }
  func.func @transform_0(%arg0: i32, %arg1: i32, %arg2: i32) -> (i32, i32) {
    %c0_i32 = arith.constant 0 : i32
    return %arg0, %arg2 : i32, i32
  }
  func.func @transform_1(%arg0: i32, %arg1: i32, %arg2: i32) -> (i32, i32) {
    %c0_i32 = arith.constant 0 : i32
    return %arg2, %arg1 : i32, i32
  }
  func.func @transform_2(%arg0: i32, %arg1: i32, %arg2: i32) -> (i32, i32) {
    %c0_i32 = arith.constant 0 : i32
    %c0_i32_0 = arith.constant 0 : i32
    return %c0_i32, %arg1 : i32, i32
  }
  func.func @transform_3(%arg0: i32, %arg1: i32, %arg2: i32) -> (i32, i32) {
    %c0_i32 = arith.constant 0 : i32
    return %arg0, %arg1 : i32, i32
  }
  func.func @transform_4(%arg0: i32, %arg1: i32, %arg2: i32) -> (i32, i32) {
    %c0_i32 = arith.constant 0 : i32
    return %arg0, %arg1 : i32, i32
  }
}

module attributes {stable_mosaic.version = 11 : i64} {
  func.func @_layernorm_kernel(%arg0: i32, %arg1: memref<10x32xf32, #tpu.memory_space<vmem>>, %arg2: memref<1x32xf32, #tpu.memory_space<vmem>>, %arg3: memref<1x32xf32, #tpu.memory_space<vmem>>, %arg4: memref<10x32xf32, #tpu.memory_space<vmem>>) attributes {dimension_semantics = [#tpu.dimension_semantics<parallel>], iteration_bounds = array<i64: 1>, scalar_prefetch = 0 : i64, scratch_operands = 0 : i64, tpu.core_type = #tpu.core_type<tc>, window_params = [{transform_indices = @transform_0, window_bounds = array<i64: 10, 32>}, {pipeline_mode = #tpu.pipeline_mode<synchronous>, transform_indices = @transform_1, window_bounds = array<i64: 1, 32>}, {pipeline_mode = #tpu.pipeline_mode<synchronous>, transform_indices = @transform_2, window_bounds = array<i64: 1, 32>}, {transform_indices = @transform_3, window_bounds = array<i64: 10, 32>}]} {
    %c0 = arith.constant 0 : index
    %c0_0 = arith.constant 0 : index
    %0 = vector.load %arg1[%c0, %c0_0] : memref<10x32xf32, #tpu.memory_space<vmem>>, vector<10x32xf32>
    %cst = arith.constant dense<0.000000e+00> : vector<10xf32>
    %1 = vector.multi_reduction <add>, %0, %cst [1] : vector<10x32xf32> to vector<10xf32>
    %2 = vector.shape_cast %1 : vector<10xf32> to vector<10x1xf32>
    %cst_1 = arith.constant 3.200000e+01 : f32
    %3 = vector.broadcast %cst_1 : f32 to vector<10x1xf32>
    %4 = arith.divf %2, %3 : vector<10x1xf32>
    %5 = vector.broadcast %4 : vector<10x1xf32> to vector<10x32xf32>
    %6 = arith.subf %0, %5 : vector<10x32xf32>
    %7 = arith.mulf %6, %6 : vector<10x32xf32>
    %cst_2 = arith.constant dense<0.000000e+00> : vector<10xf32>
    %8 = vector.multi_reduction <add>, %7, %cst_2 [1] : vector<10x32xf32> to vector<10xf32>
    %9 = vector.shape_cast %8 : vector<10xf32> to vector<10x1xf32>
    %cst_3 = arith.constant 3.200000e+01 : f32
    %10 = vector.broadcast %cst_3 : f32 to vector<10x1xf32>
    %11 = arith.divf %9, %10 : vector<10x1xf32>
    %cst_4 = arith.constant 9.99999974E-6 : f32
    %12 = vector.broadcast %cst_4 : f32 to vector<10x1xf32>
    %13 = arith.addf %11, %12 : vector<10x1xf32>
    %14 = math.rsqrt %13 : vector<10x1xf32>
    %15 = vector.broadcast %14 : vector<10x1xf32> to vector<10x32xf32>
    %16 = arith.mulf %6, %15 : vector<10x32xf32>
    %c0_5 = arith.constant 0 : index
    %c0_6 = arith.constant 0 : index
    %17 = vector.load %arg2[%c0_5, %c0_6] : memref<1x32xf32, #tpu.memory_space<vmem>>, vector<1x32xf32>
    %18 = vector.broadcast %17 : vector<1x32xf32> to vector<10x32xf32>
    %19 = arith.mulf %16, %18 : vector<10x32xf32>
    %c0_7 = arith.constant 0 : index
    %c0_8 = arith.constant 0 : index
    %20 = vector.load %arg3[%c0_7, %c0_8] : memref<1x32xf32, #tpu.memory_space<vmem>>, vector<1x32xf32>
    %21 = vector.broadcast %20 : vector<1x32xf32> to vector<10x32xf32>
    %22 = arith.addf %19, %21 : vector<10x32xf32>
    %c0_9 = arith.constant 0 : index
    %c0_10 = arith.constant 0 : index
    %23 = vector.load %arg4[%c0_9, %c0_10] : memref<10x32xf32, #tpu.memory_space<vmem>>, vector<10x32xf32>
    tpu.vector_store %arg4[%c0_9, %c0_10], %22 {strides = array<i32>} : memref<10x32xf32, #tpu.memory_space<vmem>>, vector<10x32xf32>,
    return
  }
  func.func @transform_0(%arg0: i32) -> (i32, i32) {
    %c0_i32 = arith.constant 0 : i32
    %c0_i32_0 = arith.constant 0 : i32
    return %arg0, %c0_i32 : i32, i32
  }
  func.func @transform_1(%arg0: i32) -> (i32, i32) {
    %c0_i32 = arith.constant 0 : i32
    %c0_i32_0 = arith.constant 0 : i32
    %c0_i32_1 = arith.constant 0 : i32
    return %c0_i32, %c0_i32_0 : i32, i32
  }
  func.func @transform_2(%arg0: i32) -> (i32, i32) {
    %c0_i32 = arith.constant 0 : i32
    %c0_i32_0 = arith.constant 0 : i32
    %c0_i32_1 = arith.constant 0 : i32
    return %c0_i32, %c0_i32_0 : i32, i32
  }
  func.func @transform_3(%arg0: i32) -> (i32, i32) {
    %c0_i32 = arith.constant 0 : i32
    %c0_i32_0 = arith.constant 0 : i32
    return %arg0, %c0_i32 : i32, i32
  }
}

</mosaic_0001>

<bundles_post_ra>
// kernel: vit_forward.15
= control target key start
LH: loop header
LB: loop body
LE: loop exit
PB: predicated region body
PF: predicated region fallthrough
CT: control target
= control target key end

     0   :  { %vm22_vm0 = vcmask 261120   ;;  %v146_v0 = vmov 0.0   ;;  %vm147_vm1 = vmmov 0   ;;  %vm24_vm2 = vcmask 254976   ;;  %s204_s1 = inlined_call_operand.vmem [shape: bf16[32,32], index: 1, kind: input, shape index: {}]   ;;  %s205_s0 = inlined_call_operand.vmem [shape: bf16[10,32], index: 0, kind: input, shape index: {}]   ;;  %s206_s2 = inlined_call_operand.vmem [shape: f32[1,32], index: 2, kind: input, shape index: {}]   ;;  %s207_s3 = inlined_call_operand.vmem [shape: f32[10,32], index: 3, kind: input, shape index: {}]   ;;  %s208_s4 = inlined_call_operand.vmem [shape: f32[10,32], index: 4, kind: output, shape index: {}]  }
   0x1   :  { %133 = vmatprep.subr.bf16.mxu0 %v146_v0  ;;  %v143_v1 = vld [vmem:[%s204_s1] sm:$0xff]   ;;  %137 = vmatprep.mubr.msk.bf16.mxu0 %vm147_vm1, %v146_v0  ;;  %23 = vst.msk [vmem:[#allocation2] sm:$0xff] %vm22_vm0, %v146_v0  ;;  %v144_v2 = vld [vmem:[%s204_s1 + $0x8] sm:$0xff]  }
   0x2   :  { %134 = vmatpush3.bf16.msra.mxu0 %v143_v1  ;;  %v145_v3 = vld [vmem:[%s205_s0] sm:$0x1f]   ;;  %25 = vst.msk [vmem:[#allocation2 + $0x8] sm:$0x3] %vm24_vm2, %v146_v0  ;;  %v116_v17 = vld [vmem:[%s207_s3 + $0x8] sm:$0x3] }
   0x3   :  { %135 = vmatprep.subr.bf16.mxu0 %v146_v0  ;;  %v129_v12 = vld [vmem:[%s206_s2] ss:$0 sm:$0xff] }
   0x4   :  { %v115_v14 = vld [vmem:[%s207_s3] sm:$0xff] }
   0x6   :  { %136 = vmatpush3.bf16.msra.mxu0 %v144_v2 }
   0x8   :  { %v26_v4 = vld [vmem:[#allocation2] sm:$0xff] }
   0x9   :  { %138 = vmatmul.mubr.msk.bf16.vlgmr.msra.gmra.mrb[0].mxu0 %vm22_vm0, %v145_v3  ;;  %v27_v6 = vld [vmem:[#allocation2 + $0x8] sm:$0x3] }
  0xdc   :  { %v89_v5 = vpop.f32.mrb[0].mxu0 }
  0xdd   :  { %v96_v7 = vadd.f32 %v89_v5, %v26_v4  ;;  %v139_v8 = vpop.f32.mrb[1].mxu0 }
  0xde   :  { %v92_v9 = vpop.f32.mrb[2].mxu0 }
  0xdf   :  { %98 = vst.msk [vmem:[#allocation2] sm:$0xff] %vm22_vm0, %v96_v7  ;;  %v97_v10 = vadd.f32 %v92_v9, %v27_v6  ;;  %v140_v11 = vpop.f32.mrb[3].mxu0 }
  0xe1   :  { %100 = vst.msk [vmem:[#allocation2 + $0x8] sm:$0x3] %vm24_vm2, %v97_v10 }
  0xe6   :  { %v104_v13 = vld [vmem:[#allocation2] sm:$0xff] }
  0xe7   :  { %v113_v15 = vadd.f32 %v129_v12, %v104_v13 }
  0xe8   :  { %v105_v16 = vld [vmem:[#allocation2 + $0x8] sm:$0x3] }
  0xe9   :  { %v114_v18 = vadd.f32 %v129_v12, %v105_v16  ;;  %v117_v19 = vadd.f32 %v115_v14, %v113_v15 }
  0xeb   :  { %v118_v20 = vadd.f32 %v116_v17, %v114_v18  ;;  %119 = vst.msk [vmem:[%s208_s4] sm:$0xff] %vm22_vm0, %v117_v19 }
  0xed   :  { %120 = vst.msk [vmem:[%s208_s4 + $0x8] sm:$0x3] %vm24_vm2, %v118_v20 }

// kernel: vit_forward.13
= control target key start
LH: loop header
LB: loop body
LE: loop exit
PB: predicated region body
PF: predicated region fallthrough
CT: control target
= control target key end

     0   :  { %vm23_vm0 = vcmask 261120   ;;  %vm27_vm1 = vcmask 254976   ;;  %v183_v15 = vmov 0.0   ;;  %vm184_vm2 = vmmov 0   ;;  %s245_s0 = inlined_call_operand.vmem [shape: f32[10,32], index: 0, kind: input, shape index: {}]   ;;  %s246_s3 = inlined_call_operand.vmem [shape: bf16[32,96], index: 3, kind: input, shape index: {}]   ;;  %s247_s1 = inlined_call_operand.vmem [shape: f32[1,32], index: 1, kind: input, shape index: {}]   ;;  %s248_s2 = inlined_call_operand.vmem [shape: f32[1,32], index: 2, kind: input, shape index: {}]   ;;  %s249_s4 = inlined_call_operand.vmem [shape: f32[1,96], index: 4, kind: input, shape index: {}]   ;;  %s250_s5 = inlined_call_operand.vmem [shape: bf16[10,96], index: 5, kind: output, shape index: {}]  }
   0x1   :  { %v21_v0 = vld [vmem:[%s245_s0] sm:$0xff]  ;;  %v22_v1 = vld [vmem:[%s245_s0 + $0x8] sm:$0x3]  ;;  %167 = vmatprep.subr.bf16.mxu0 %v183_v15  ;;  %171 = vmatprep.mubr.msk.bf16.mxu0 %vm184_vm2, %v183_v15  ;;  %vm146_vm3 = vcmask 781312   ;;  %vm148_vm4 = vcmask 778240  }
   0x2   :  { %v24_v2 = vsel %vm23_vm0, %v21_v0, 0.0  ;;  %v28_v3 = vsel %vm27_vm1, %v22_v1, 0.0  ;;  %v177_v14 = vld [vmem:[%s246_s3] sm:$0xff]   ;;  %v178_v16 = vld [vmem:[%s246_s3 + $0x8] sm:$0xff]  }
   0x3   :  { %25 = vadd.xlane.f32.xlu0 %v24_v2  ;;  %168 = vmatpush3.bf16.msra.mxu0 %v177_v14  ;;  %v154_v25 = vld [vmem:[%s247_s1] ss:$0 sm:$0xff] }
   0x4   :  { %169 = vmatprep.subr.bf16.mxu0 %v183_v15  ;;  %v155_v29 = vld [vmem:[%s248_s2] ss:$0 sm:$0xff] }
   0x5   :  { %v156_v34 = vld [vmem:[%s249_s4] ss:$0 sm:$0xff] }
   0x7   :  { %29 = vadd.xlane.f32.xlu0 %v28_v3  ;;  %170 = vmatpush3.bf16.msra.mxu0 %v178_v16 }
  0x90   :  { %v26_v4 = vpop.xlane.xlu0 %25 }
  0x91   :  { %v32_v5 = vmul.f32 0.03125, %v26_v4 }
  0x93   :  { %v34_v6 = vsub.f32 %v21_v0, %v32_v5 }
  0x94   :  { %v30_v7 = vpop.xlane.xlu0 %29 }
  0x95   :  { %v33_v8 = vmul.f32 0.03125, %v30_v7  ;;  %v36_v9 = vmul.f32 %v34_v6, %v34_v6 }
  0x97   :  { %v35_v10 = vsub.f32 %v22_v1, %v33_v8  ;;  %v38_v11 = vsel %vm23_vm0, %v36_v9, 0.0 }
  0x98   :  { %39 = vadd.xlane.f32.xlu1 %v38_v11 }
  0x99   :  { %v37_v12 = vmul.f32 %v35_v10, %v35_v10 }
  0x9b   :  { %v41_v13 = vsel %vm27_vm1, %v37_v12, 0.0 }
  0x9c   :  { %42 = vadd.xlane.f32.xlu1 %v41_v13 }
 0x125   :  { %v40_v17 = vpop.xlane.xlu1 %39 }
 0x126   :  { %v44_v18 = vmul.f32 0.03125, %v40_v17 }
 0x128   :  { %v46_v19 = vadd.f32 1e-05, %v44_v18 }
 0x129   :  { %v43_v20 = vpop.xlane.xlu1 %42 }
 0x12a   :  { %179 = vrsqrt.f32 %v46_v19  ;;  %v45_v21 = vmul.f32 0.03125, %v43_v20 }
 0x12c   :  { %v47_v22 = vadd.f32 1e-05, %v45_v21 }
 0x12e   :  { %181 = vrsqrt.f32 %v47_v22 }
 0x134   :  { %v180_v23 = vpop.eup %179 }
 0x135   :  { %v50_v24 = vmul.f32 %v180_v23, %v34_v6 }
 0x137   :  { %v59_v28 = vmul.f32 %v154_v25, %v50_v24 }
 0x138   :  { %v182_v26 = vpop.eup %181 }
 0x139   :  { %v51_v27 = vmul.f32 %v182_v26, %v35_v10  ;;  %v68_v31 = vadd.f32 %v155_v29, %v59_v28 }
 0x13b   :  { %v60_v30 = vmul.f32 %v154_v25, %v51_v27 }
 0x13d   :  { %v69_v32 = vadd.f32 %v155_v29, %v60_v30 }
 0x13f   :  { %v70_v33 = vpack.c.bf16 %v69_v32, %v68_v31 }
 0x141   :  { %172 = vmatmul.mubr.msk.bf16.vlgmr.msra.gmra.mrb[0].mxu0 %vm23_vm0, %v70_v33 }
 0x214   :  { %v131_v35 = vpop.f32.mrb[0].mxu0 }
 0x215   :  { %v132_v36 = vadd.f32 %v156_v34, %v131_v35  ;;  %v173_v37 = vpop.f32.mrb[1].mxu0 }
 0x216   :  { %v134_v38 = vpop.f32.mrb[2].mxu0 }
 0x217   :  { %v162_v39 = vpack.c.bf16 %v132_v36, %v132_v36  ;;  %v135_v40 = vadd.f32 %v156_v34, %v134_v38  ;;  %v174_v41 = vpop.f32.mrb[3].mxu0 }
 0x219   :  { %147 = vst.msk [vmem:[%s250_s5] sm:$0xf] %vm146_vm3, %v162_v39  ;;  %v163_v42 = vpack.c.bf16 %v135_v40, %v135_v40 }
 0x21b   :  { %149 = vst.msk [vmem:[%s250_s5 + $0x4] sm:$0x1] %vm148_vm4, %v163_v42 }

// kernel: vit_forward.12
= control target key start
LH: loop header
LB: loop body
LE: loop exit
PB: predicated region body
PF: predicated region fallthrough
CT: control target
= control target key end

     0   :  { %vm19_vm0 = vcmask 261120   ;;  %v278_v19 = vmov 0.0   ;;  %s359_s1 = inlined_call_operand.vmem [shape: bf16[256,32], index: 1, kind: input, shape index: {}]   ;;  %s360_s0 = inlined_call_operand.vmem [shape: bf16[8,256], index: 0, kind: input, shape index: {}]   ;;  %s361_s2 = inlined_call_operand.vmem [shape: f32[1,32], index: 2, kind: input, shape index: {}]   ;;  %s362_s3 = inlined_call_operand.vmem [shape: f32[8,32], index: 3, kind: output, shape index: {}]  }
   0x1   :  { %v260_v0 = vld [vmem:[%s359_s1 + $0x40] sm:$0xff]   ;;  %v262_v2 = vld [vmem:[%s359_s1 + $0x48] sm:$0xff]   ;;  %v264_v4 = vld [vmem:[%s359_s1 + $0x50] sm:$0xff]   ;;  %20 = vst.msk [vmem:[#allocation2] sm:$0xff] %vm19_vm0, %v278_v19 }
   0x2   :  { %v261_v1 = vld [vmem:[%s359_s1] sm:$0xff]   ;;  %237 = vmatprep.subr.bf16.mxu0 %v260_v0  ;;  %v263_v3 = vld [vmem:[%s359_s1 + $0x8] sm:$0xff]   ;;  %v265_v5 = vld [vmem:[%s359_s1 + $0x10] sm:$0xff]  }
   0x3   :  { %238 = vmatpush3.bf16.msra.mxu0 %v261_v1  ;;  %v266_v6 = vld [vmem:[%s359_s1 + $0x58] sm:$0xff]   ;;  %v268_v8 = vld [vmem:[%s359_s1 + $0x60] sm:$0xff]   ;;  %v270_v10 = vld [vmem:[%s359_s1 + $0x68] sm:$0xff]  }
   0x4   :  { %239 = vmatprep.subr.bf16.mxu0 %v262_v2  ;;  %v267_v7 = vld [vmem:[%s359_s1 + $0x18] sm:$0xff]   ;;  %v269_v9 = vld [vmem:[%s359_s1 + $0x20] sm:$0xff]   ;;  %v271_v13 = vld [vmem:[%s359_s1 + $0x28] sm:$0xff]  }
   0x5   :  { %v22_v11 = vld [vmem:[%s360_s0] sm:$0xff]  ;;  %v272_v14 = vld [vmem:[%s359_s1 + $0x70] sm:$0xff]   ;;  %v274_v16 = vld [vmem:[%s359_s1 + $0x78] sm:$0xff]  }
   0x6   :  { %v219_v12 = vcombine.high %v22_v11, %v22_v11  ;;  %v273_v15 = vld [vmem:[%s359_s1 + $0x30] sm:$0xff]   ;;  %v275_v17 = vld [vmem:[%s359_s1 + $0x38] sm:$0xff]   ;;  %v218_v18 = vcombine.low %v22_v11, %v22_v11  ;;  %v236_v27 = vld [vmem:[%s361_s2] ss:$0 sm:$0xff] }
   0x7   :  { %240 = vmatpush3.bf16.msra.mxu0 %v263_v3 }
   0x8   :  { %241 = vmatprep.subr.bf16.mxu0 %v264_v4  ;;  %190 = vmatprep.mubr.bf16.mxu0 %v219_v12  ;;  %v21_v21 = vld [vmem:[#allocation2] sm:$0xff] }
   0xb   :  { %242 = vmatpush3.bf16.msra.mxu0 %v265_v5 }
   0xc   :  { %243 = vmatprep.subr.bf16.mxu0 %v266_v6 }
   0xf   :  { %244 = vmatpush3.bf16.msra.mxu0 %v267_v7 }
  0x10   :  { %245 = vmatprep.subr.bf16.mxu0 %v268_v8 }
  0x13   :  { %246 = vmatpush3.bf16.msra.mxu0 %v269_v9 }
  0x14   :  { %247 = vmatprep.subr.bf16.mxu0 %v270_v10 }
  0x17   :  { %248 = vmatpush3.bf16.msra.mxu0 %v271_v13 }
  0x18   :  { %249 = vmatprep.subr.bf16.mxu0 %v272_v14 }
  0x1b   :  { %250 = vmatpush3.bf16.msra.mxu0 %v273_v15 }
  0x1c   :  { %251 = vmatprep.subr.bf16.mxu0 %v274_v16 }
  0x1f   :  { %252 = vmatpush3.bf16.msra.mxu0 %v275_v17 }
  0x22   :  { %191 = vmatmul.mubr.bf16.vlgmr.msra.gmra.mrb[0].mxu0 %v218_v18 }
  0xf5   :  { %v253_v20 = vpop.f32.mrb[0].mxu0 }
  0xf6   :  { %v254_v22 = vpop.f32.mrb[1].mxu0 }
  0xf7   :  { %v255_v23 = vadd.f32 %v254_v22, %v253_v20  ;;  %v256_v24 = vpop.f32.mrb[2].mxu0 }
  0xf8   :  { %v257_v25 = vpop.f32.mrb[3].mxu0 }
  0xf9   :  { %v198_v26 = vadd.f32 %v255_v23, %v21_v21 }
  0xfb   :  { %200 = vst.msk [vmem:[#allocation2] sm:$0xff] %vm19_vm0, %v198_v26 }
 0x102   :  { %v204_v28 = vld [vmem:[#allocation2] sm:$0xff] }
 0x103   :  { %v212_v29 = vadd.f32 %v236_v27, %v204_v28 }
 0x105   :  { %213 = vst.msk [vmem:[%s362_s3] sm:$0xff] %vm19_vm0, %v212_v29 }

// kernel: vit_forward.14
= control target key start
LH: loop header
LB: loop body
LE: loop exit
PB: predicated region body
PF: predicated region fallthrough
CT: control target
= control target key end

     0   :  { %s802_s6 = smov 0   ;;  %s893_s0 = inlined_call_operand.vmem [shape: bf16[2,5,96], index: 0, kind: input, shape index: {}]   ;;  %s894_s1 = inlined_call_operand.vmem [shape: bf16[2,5,32], index: 1, kind: output, shape index: {}]  }
   0x1 LB: > { %s643_s7 = sadd.s32 4294967295, %s773_s6   ;;  %p647_p0 = scmp.ge.s32.totalorder %s773_s6, 1  ;;  %s773_s6 = sphi %s802_s6, %s11_s6  }
   0x2   : > { %p86_p1 = scmp.lt.s32.totalorder %s773_s6, 3 }
   0x4   : > { %p87_p2 = pnand %p647_p0, %p86_p1 }
   0x5   : > { %p104_p3 = scmp.lt.s32.totalorder (!%p87_p2), %s643_s7, 1  ;;  %v775_v0 = vmov (!%p87_p2), 0.0   ;;  %vm776_vm0 = vmmov (!%p87_p2), 0   ;;  %s777_s12 = smov (!%p87_p2), 96   ;;  %vm119_vm1 = vcmask (!%p87_p2), 64512   ;;  %vm167_vm2 = vcmask (!%p87_p2), 36864  }
   0x6   : > { %90 = sbr.rel (%p87_p2) target bundleno = 1560 (0x618), region = 24  ;;  %677 = vmatprep.subr.bf16.mxu0 (!%p87_p2), %v775_v0  ;;  %679 = vmatprep.mubr.msk.bf16.mxu0 (!%p87_p2), %vm776_vm0, %v775_v0  ;;  %s778_s13 = smov (!%p87_p2), 64   ;;  %vm186_vm3 = vcmask (!%p87_p2), 1041408   ;;  %vm187_vm4 = vcmask (!%p87_p2), 1042432   ;;  %v781_v12 = vmov (!%p87_p2), 65535   ;;  %vm182_vm5 = vcmask (!%p87_p2), 39936  }
   0x7   : > { %683 = vmatprep.subr.bf16.mxu1 (!%p87_p2), %v775_v0  ;;  %685 = vmatprep.mubr.msk.bf16.mxu1 (!%p87_p2), %vm776_vm0, %v775_v0  ;;  %s779_s14 = smov (!%p87_p2), 88   ;;  %s780_s15 = smov (!%p87_p2), 72   ;;  %v188_v13 = vsel (!%p87_p2), %vm186_vm3, 4294967295, %v781_v12  ;;  %vm579_vm6 = vcmask (!%p87_p2), 130048   ;;  %vm581_vm7 = vcmask (!%p87_p2), 195584   ;;  %vm584_vm8 = vcmask (!%p87_p2), 256000  }
   0x8   : > { %v836_v14 = vsel (!%p87_p2), %vm187_vm4, %v188_v13, 0  ;;  %s782_s16 = smov (!%p87_p2), 120   ;;  %s783_s17 = smov (!%p87_p2), 80   ;;  %vm585_vm9 = vsmask.f32 (!%p87_p2), 2304 }
   0x9   : > { %s784_s18 = smov (!%p87_p2), 112   ;;  %s785_s19 = smov (!%p87_p2), 104   ;;  %vm586_vm10 = vmand (!%p87_p2), %vm584_vm8, %vm585_vm9 }
   0xa   : > { %s786_s20 = smov (!%p87_p2), 56   ;;  %s787_s21 = smov (!%p87_p2), 40  }
   0xb   : > { %s788_s22 = smov (!%p87_p2), 48   ;;  %s789_s23 = smov (!%p87_p2), 8  }
   0xc   : > { %s790_s24 = smov (!%p87_p2), 16   ;;  %s791_s25 = smov (!%p87_p2), 24  }
   0xd   : > { %s896_s7 = smov (!%p104_p3, %s643_s7), 1 }
   0xe   : > { %s648_s8 = sshll.u32 %s896_s7, 2 }
   0xf   : > { %s107_s11 = scalar_lea.vmem %s893_s0, %s648_s8  ;;  %s111_s28 = scalar_lea.vmem %s894_s1, %s648_s8 }
  0x10   : > { %v113_v1 = vld [vmem:[%s107_s11] sm:$0x7] }
  0x11   : > { %v824_v2 = vcombine.low %v113_v1, %v113_v1 }
  0x13   : > { %117 = vrot.lane.b32.xlu0 %v824_v2, %s777_s12  ;;  %180 = vrot.lane.b32.xlu1 %v824_v2, %s778_s13 }
  0x17   : > { %235 = vrot.lane.b32.xlu1 %v824_v2, %s779_s14 }
  0x85   : > { %v118_v3 = vpop.permute.xlu0 %117  ;;  %v181_v11 = vpop.permute.xlu1 %180 }
  0x86   : > { %v124_v4 = vsel %vm119_vm1, %v118_v3, 0  ;;  %v191_v15 = vand.u32 %v836_v14, %v181_v11 }
  0x87   : > { %678 = vmatpush3.bf16.xpose.msra.mxu0 %v124_v4 }
  0x88   : > { %695 = vmatprep.subr.bf16.mxu0 %v775_v0  ;;  %684 = vmatpush3.bf16.msra.mxu1 %v191_v15 }
  0x89   : > { %689 = vmatprep.subr.bf16.mxu1 %v775_v0  ;;  %v236_v21 = vpop.permute.xlu1 %235 }
  0x8a   : > { %v241_v27 = vsel %vm119_vm1, %v236_v21, 0 }
  0x8e   : > { %680 = vmatmul.mubr.msk.bf16.vlgmr.msra.gmra.mrb[0].mxu0 %vm119_vm1, %v113_v1 }
  0x8f   : > { %697 = vmatprep.mubr.msk.bf16.mxu0 %vm776_vm0, %v775_v0 }
 0x161   : > { %v160_v5 = vpop.f32.mrb[0].mxu0 }
 0x162   : > { %v166_v6 = vmul.f32 0.35355338, %v160_v5  ;;  %v681_v7 = vpop.f32.mrb[1].mxu0 }
 0x163   : > { %v163_v8 = vpop.f32.mrb[2].mxu0 }
 0x164   : > { %v682_v9 = vpop.f32.mrb[3].mxu0  ;;  %v168_v10 = vsel %vm167_vm2, %v166_v6, -inf }
 0x165   : > { %169 = vmax.xlane.f32.xlu0 %v168_v10 }
 0x17b   : > { %457 = vrot.lane.b32.xlu0 %v824_v2, %s780_s15 }
 0x1f2   : > { %v170_v16 = vpop.xlane.xlu0 %169 }
 0x1f3   : > { %v171_v17 = vsub.f32 %v166_v6, %v170_v16 }
 0x1f5   : > { %v172_v18 = vmul.f32 1.442695, %v171_v17 }
 0x1f6   : > { %v458_v30 = vpop.permute.xlu0 %457 }
 0x1f7   : > { %751 = vpow2.f32 %v172_v18  ;;  %v463_v32 = vsel %vm119_vm1, %v458_v30, 0 }
 0x201   : > { %v752_v19 = vpop.eup %751 }
 0x202   : > { %v174_v20 = vsel %vm167_vm2, %v752_v19, 0.0 }
 0x203   : > { %175 = vadd.xlane.f32.xlu1 %v174_v20 }
 0x214   : > { %233 = vrot.lane.b32.xlu1 %v824_v2, %s782_s16 }
 0x218   : > { %346 = vrot.lane.b32.xlu1 %v824_v2, %s783_s17 }
 0x21c   : > { %344 = vrot.lane.b32.xlu1 %v824_v2, %s784_s18 }
 0x220   : > { %455 = vrot.lane.b32.xlu1 %v824_v2, %s785_s19 }
 0x290   : > { %v176_v22 = vpop.xlane.xlu1 %175 }
 0x291   : > { %753 = vrcp.f32 %v176_v22 }
 0x294   : > { %v234_v25 = vpop.permute.xlu1 %233 }
 0x298   : > { %v347_v28 = vpop.permute.xlu1 %346 }
 0x299   : > { %v352_v29 = vsel %vm119_vm1, %v347_v28, 0 }
 0x29b   : > { %v754_v23 = vpop.eup %753 }
 0x29c   : > { %v178_v24 = vmul.f32 %v754_v23, %v752_v19  ;;  %v345_v31 = vpop.permute.xlu1 %344 }
 0x29e   : > { %v179_v26 = vpack.c.bf16 %v178_v24, %v178_v24 }
 0x2a0   : > { %686 = vmatmul.mubr.msk.bf16.vlgmr.msra.gmra.mrb[0].mxu1 %vm182_vm5, %v179_v26  ;;  %v456_v33 = vpop.permute.xlu1 %455 }
 0x2a1   : > { %690 = vmatpush3.bf16.xpose.msra.mxu1 %v241_v27  ;;  %691 = vmatprep.mubr.msk.bf16.mxu1 %vm776_vm0, %v775_v0 }
 0x2a2   : > { %701 = vmatprep.subr.bf16.mxu1 %v775_v0 }
 0x2a8   : > { %692 = vmatmul.mubr.msk.bf16.vlgmr.msra.gmra.mrb[4].mxu1 %vm119_vm1, %v234_v25 }
 0x2a9   : > { %702 = vmatpush3.bf16.xpose.msra.mxu1 %v352_v29  ;;  %703 = vmatprep.mubr.msk.bf16.mxu1 %vm776_vm0, %v775_v0 }
 0x2aa   : > { %713 = vmatprep.subr.bf16.mxu1 %v775_v0 }
 0x2b0   : > { %704 = vmatmul.mubr.msk.bf16.vlgmr.msra.gmra.mrb[8].mxu1 %vm119_vm1, %v345_v31 }
 0x2b1   : > { %714 = vmatpush3.bf16.xpose.msra.mxu1 %v463_v32  ;;  %715 = vmatprep.mubr.msk.bf16.mxu1 %vm776_vm0, %v775_v0 }
 0x2b8   : > { %716 = vmatmul.mubr.msk.bf16.vlgmr.msra.gmra.mrb[12].mxu1 %vm119_vm1, %v456_v33 }
 0x373   : > { %v860_v34 = vpop.f32.mrb[0].mxu1 }
 0x374   : > { %v687_v35 = vpop.f32.mrb[1].mxu1 }
 0x375   : > { %v230_v36 = vpop.f32.mrb[2].mxu1 }
 0x376   : > { %v688_v37 = vpop.f32.mrb[3].mxu1 }
 0x37b   : > { %v277_v38 = vpop.f32.mrb[4].mxu1 }
 0x37c   : > { %v283_v39 = vmul.f32 0.35355338, %v277_v38  ;;  %v693_v40 = vpop.f32.mrb[5].mxu1 }
 0x37d   : > { %v280_v41 = vpop.f32.mrb[6].mxu1 }
 0x37e   : > { %v694_v42 = vpop.f32.mrb[7].mxu1  ;;  %v284_v43 = vsel %vm167_vm2, %v283_v39, -inf }
 0x37f   : > { %285 = vmax.xlane.f32.xlu1 %v284_v43  ;;  %v587_v43 = vld [vmem:[%s111_s28] sm:$0x7] }
 0x383   : > { %v388_v44 = vpop.f32.mrb[8].mxu1 }
 0x384   : > { %v394_v45 = vmul.f32 0.35355338, %v388_v44  ;;  %v705_v46 = vpop.f32.mrb[9].mxu1 }
 0x385   : > { %v391_v47 = vpop.f32.mrb[10].mxu1 }
 0x386   : > { %v706_v48 = vpop.f32.mrb[11].mxu1  ;;  %v395_v49 = vsel %vm167_vm2, %v394_v45, -inf }
 0x387   : > { %396 = vmax.xlane.f32.xlu0 %v395_v49 }
 0x38b   : > { %v499_v50 = vpop.f32.mrb[12].mxu1 }
 0x38c   : > { %v505_v51 = vmul.f32 0.35355338, %v499_v50  ;;  %v717_v52 = vpop.f32.mrb[13].mxu1 }
 0x38d   : > { %v502_v53 = vpop.f32.mrb[14].mxu1 }
 0x38e   : > { %v718_v54 = vpop.f32.mrb[15].mxu1  ;;  %v506_v55 = vsel %vm167_vm2, %v505_v51, -inf }
 0x38f   : > { %507 = vmax.xlane.f32.xlu1 %v506_v55 }
 0x3a0   : > { %296 = vrot.lane.b32.xlu1 %v824_v2, %s786_s20 }
 0x40c   : > { %v286_v56 = vpop.xlane.xlu1 %285 }
 0x40d   : > { %v287_v57 = vsub.f32 %v283_v39, %v286_v56 }
 0x40f   : > { %v288_v58 = vmul.f32 1.442695, %v287_v57 }
 0x411   : > { %755 = vpow2.f32 %v288_v58 }
 0x414   : > { %v397_v59 = vpop.xlane.xlu0 %396 }
 0x415   : > { %v398_v60 = vsub.f32 %v394_v45, %v397_v59 }
 0x417   : > { %v399_v61 = vmul.f32 1.442695, %v398_v60 }
 0x419   : > { %757 = vpow2.f32 %v399_v61 }
 0x41b   : > { %v756_v62 = vpop.eup %755 }
 0x41c   : > { %v508_v63 = vpop.xlane.xlu1 %507  ;;  %v290_v1 = vsel %vm167_vm2, %v756_v62, 0.0 }
 0x41d   : > { %v509_v3 = vsub.f32 %v505_v51, %v508_v63  ;;  %291 = vadd.xlane.f32.xlu1 %v290_v1 }
 0x41f   : > { %v510_v4 = vmul.f32 1.442695, %v509_v3 }
 0x420   : > { %v297_v5 = vpop.permute.xlu1 %296 }
 0x421   : > { %759 = vpow2.f32 %v510_v4  ;;  %v302_v6 = vand.u32 %v297_v5, %v836_v14 }
 0x423   : > { %v758_v7 = vpop.eup %757  ;;  %696 = vmatpush3.bf16.msra.mxu0 %v302_v6 }
 0x424   : > { %v401_v8 = vsel %vm167_vm2, %v758_v7, 0.0  ;;  %707 = vmatprep.subr.bf16.mxu0 %v775_v0 }
 0x425   : > { %402 = vadd.xlane.f32.xlu1 %v401_v8 }
 0x42b   : > { %v760_v9 = vpop.eup %759 }
 0x42c   : > { %v512_v10 = vsel %vm167_vm2, %v760_v9, 0.0 }
 0x42d   : > { %513 = vadd.xlane.f32.xlu0 %v512_v10 }
 0x436   : > { %518 = vrot.lane.b32.xlu1 %v824_v2, %s787_s21 }
 0x443   : > { %407 = vrot.lane.b32.xlu0 %v824_v2, %s788_s22 }
 0x4aa   : > { %v292_v11 = vpop.xlane.xlu1 %291 }
 0x4ab   : > { %761 = vrcp.f32 %v292_v11 }
 0x4b2   : > { %v403_v12 = vpop.xlane.xlu1 %402 }
 0x4b3   : > { %763 = vrcp.f32 %v403_v12 }
 0x4b5   : > { %v762_v13 = vpop.eup %761 }
 0x4b6   : > { %v294_v15 = vmul.f32 %v762_v13, %v756_v62  ;;  %v519_v21 = vpop.permute.xlu1 %518 }
 0x4b7   : > { %v524_v22 = vand.u32 %v519_v21, %v836_v14 }
 0x4b8   : > { %v295_v16 = vpack.c.bf16 %v294_v15, %v294_v15 }
 0x4ba   : > { %698 = vmatmul.mubr.msk.bf16.vlgmr.msra.gmra.mrb[4].mxu0 %vm182_vm5, %v295_v16  ;;  %v514_v17 = vpop.xlane.xlu0 %513 }
 0x4bb   : > { %765 = vrcp.f32 %v514_v17  ;;  %709 = vmatprep.mubr.msk.bf16.mxu0 %vm776_vm0, %v775_v0 }
 0x4bd   : > { %v764_v18 = vpop.eup %763 }
 0x4be   : > { %v405_v19 = vmul.f32 %v764_v18, %v758_v7  ;;  %v408_v20 = vpop.permute.xlu0 %407 }
 0x4bf   : > { %v413_v2 = vand.u32 %v408_v20, %v836_v14 }
 0x4c0   : > { %v406_v23 = vpack.c.bf16 %v405_v19, %v405_v19 }
 0x4c1   : > { %708 = vmatpush3.bf16.msra.mxu0 %v413_v2 }
 0x4c2   : > { %719 = vmatprep.subr.bf16.mxu0 %v775_v0 }
 0x4c4   : > { %710 = vmatmul.mubr.msk.bf16.vlgmr.msra.gmra.mrb[8].mxu0 %vm182_vm5, %v406_v23 }
 0x4c5   : > { %v766_v24 = vpop.eup %765  ;;  %720 = vmatpush3.bf16.msra.mxu0 %v524_v22  ;;  %721 = vmatprep.mubr.msk.bf16.mxu0 %vm776_vm0, %v775_v0 }
 0x4c6   : > { %v516_v25 = vmul.f32 %v766_v24, %v760_v9 }
 0x4c8   : > { %v517_v26 = vpack.c.bf16 %v516_v25, %v516_v25 }
 0x4cc   : > { %722 = vmatmul.mubr.msk.bf16.vlgmr.msra.gmra.mrb[12].mxu0 %vm182_vm5, %v517_v26 }
 0x58d   : > { %v338_v27 = vpop.f32.mrb[4].mxu0 }
 0x58e   : > { %567 = vrot.lane.b32.xlu1 %v338_v27, %s789_s23  ;;  %v699_v28 = vpop.f32.mrb[5].mxu0 }
 0x58f   : > { %v341_v29 = vpop.f32.mrb[6].mxu0 }
 0x590   : > { %v700_v14 = vpop.f32.mrb[7].mxu0 }
 0x597   : > { %v449_v30 = vpop.f32.mrb[8].mxu0 }
 0x598   : > { %571 = vrot.lane.b32.xlu0 %v449_v30, %s790_s24  ;;  %v711_v31 = vpop.f32.mrb[9].mxu0 }
 0x599   : > { %v452_v32 = vpop.f32.mrb[10].mxu0 }
 0x59a   : > { %v712_v33 = vpop.f32.mrb[11].mxu0 }
 0x59f   : > { %v560_v35 = vpop.f32.mrb[12].mxu0 }
 0x5a0   : > { %575 = vrot.lane.b32.xlu1 %v560_v35, %s791_s25  ;;  %v723_v0 = vpop.f32.mrb[13].mxu0 }
 0x5a1   : > { %v563_v36 = vpop.f32.mrb[14].mxu0 }
 0x5a2   : > { %v724_v37 = vpop.f32.mrb[15].mxu0 }
 0x600   : > { %v568_v38 = vpop.permute.xlu1 %567 }
 0x601   : > { %v578_v40 = vsel %vm119_vm1, %v860_v34, %v568_v38 }
 0x60a   : > { %v572_v39 = vpop.permute.xlu0 %571 }
 0x60b   : > { %v580_v41 = vsel %vm579_vm6, %v578_v40, %v572_v39 }
 0x612   : > { %v576_v42 = vpop.permute.xlu1 %575 }
 0x613   : > { %v582_v44 = vsel %vm581_vm7, %v580_v41, %v576_v42 }
 0x614   : > { %v583_v45 = vpack.c.bf16 %v582_v44, %v582_v44 }
 0x616   : > { %v588_v46 = vsel %vm586_vm10, %v583_v45, %v587_v43 }
 0x617   : > { %589 = vst [vmem:[%s111_s28] sm:$0x7] %v588_v46 }
 0x618 PF: > { %s11_s6 = sadd.s32 1, %s773_s6  }
 0x619   : > { %p8_p4 = scmp.ge.s32.totalorder %s11_s6, 4  }
 0x61b   :  { %10 = sbr.rel (!%p8_p4) target bundleno = 1 (0x1), region = 54 }

// kernel: vit_forward.23
= control target key start
LH: loop header
LB: loop body
LE: loop exit
PB: predicated region body
PF: predicated region fallthrough
CT: control target
= control target key end

     0   :  { %vm16_vm0 = vcmask 261120   ;;  %vm20_vm1 = vcmask 254976   ;;  %s119_s0 = inlined_call_operand.vmem [shape: f32[10,32], index: 0, kind: input, shape index: {}]   ;;  %s120_s1 = inlined_call_operand.vmem [shape: f32[1,32], index: 1, kind: input, shape index: {}]   ;;  %s121_s2 = inlined_call_operand.vmem [shape: f32[1,32], index: 2, kind: input, shape index: {}]   ;;  %s122_s3 = inlined_call_operand.vmem [shape: f32[10,32], index: 3, kind: output, shape index: {}]  }
   0x1   :  { %v14_v0 = vld [vmem:[%s119_s0] sm:$0xff]  ;;  %v15_v1 = vld [vmem:[%s119_s0 + $0x8] sm:$0x3] }
   0x2   :  { %v17_v2 = vsel %vm16_vm0, %v14_v0, 0.0  ;;  %v21_v3 = vsel %vm20_vm1, %v15_v1, 0.0  ;;  %v69_v21 = vld [vmem:[%s120_s1] ss:$0 sm:$0xff] }
   0x3   :  { %18 = vadd.xlane.f32.xlu0 %v17_v2  ;;  %v70_v23 = vld [vmem:[%s121_s2] ss:$0 sm:$0xff] }
   0x7   :  { %22 = vadd.xlane.f32.xlu0 %v21_v3 }
  0x90   :  { %v19_v4 = vpop.xlane.xlu0 %18 }
  0x91   :  { %v25_v5 = vmul.f32 0.03125, %v19_v4 }
  0x93   :  { %v27_v6 = vsub.f32 %v14_v0, %v25_v5 }
  0x94   :  { %v23_v7 = vpop.xlane.xlu0 %22 }
  0x95   :  { %v26_v8 = vmul.f32 0.03125, %v23_v7  ;;  %v29_v9 = vmul.f32 %v27_v6, %v27_v6 }
  0x97   :  { %v28_v10 = vsub.f32 %v15_v1, %v26_v8  ;;  %v31_v11 = vsel %vm16_vm0, %v29_v9, 0.0 }
  0x98   :  { %32 = vadd.xlane.f32.xlu1 %v31_v11 }
  0x99   :  { %v30_v12 = vmul.f32 %v28_v10, %v28_v10 }
  0x9b   :  { %v34_v13 = vsel %vm20_vm1, %v30_v12, 0.0 }
  0x9c   :  { %35 = vadd.xlane.f32.xlu1 %v34_v13 }
 0x125   :  { %v33_v14 = vpop.xlane.xlu1 %32 }
 0x126   :  { %v37_v15 = vmul.f32 0.03125, %v33_v14 }
 0x128   :  { %v39_v16 = vadd.f32 1e-05, %v37_v15 }
 0x129   :  { %v36_v17 = vpop.xlane.xlu1 %35 }
 0x12a   :  { %71 = vrsqrt.f32 %v39_v16  ;;  %v38_v18 = vmul.f32 0.03125, %v36_v17 }
 0x12c   :  { %v40_v19 = vadd.f32 1e-05, %v38_v18 }
 0x12e   :  { %73 = vrsqrt.f32 %v40_v19 }
 0x134   :  { %v72_v20 = vpop.eup %71 }
 0x135   :  { %v43_v22 = vmul.f32 %v72_v20, %v27_v6 }
 0x137   :  { %v52_v24 = vmul.f32 %v69_v21, %v43_v22 }
 0x138   :  { %v74_v25 = vpop.eup %73 }
 0x139   :  { %v61_v26 = vadd.f32 %v70_v23, %v52_v24  ;;  %v44_v27 = vmul.f32 %v74_v25, %v28_v10 }
 0x13b   :  { %63 = vst.msk [vmem:[%s122_s3] sm:$0xff] %vm16_vm0, %v61_v26  ;;  %v53_v28 = vmul.f32 %v69_v21, %v44_v27 }
 0x13d   :  { %v62_v29 = vadd.f32 %v70_v23, %v53_v28 }
 0x13f   :  { %64 = vst.msk [vmem:[%s122_s3 + $0x8] sm:$0x3] %vm20_vm1, %v62_v29 }

// kernel: vit_forward.17
= control target key start
LH: loop header
LB: loop body
LE: loop exit
PB: predicated region body
PF: predicated region fallthrough
CT: control target
= control target key end

     0   :  { %vm22_vm0 = vcmask 261120   ;;  %v221_v0 = vmov 0.0   ;;  %vm222_vm1 = vmmov 0   ;;  %vm24_vm2 = vcmask 254976   ;;  %s296_s1 = inlined_call_operand.vmem [shape: bf16[128,32], index: 1, kind: input, shape index: {}]   ;;  %s297_s0 = inlined_call_operand.vmem [shape: bf16[10,128], index: 0, kind: input, shape index: {}]   ;;  %s298_s2 = inlined_call_operand.vmem [shape: f32[1,32], index: 2, kind: input, shape index: {}]   ;;  %s299_s3 = inlined_call_operand.vmem [shape: f32[10,32], index: 3, kind: input, shape index: {}]   ;;  %s300_s4 = inlined_call_operand.vmem [shape: f32[10,32], index: 4, kind: output, shape index: {}]  }
   0x1   :  { %190 = vmatprep.subr.bf16.mxu0 %v221_v0  ;;  %v212_v1 = vld [vmem:[%s296_s1] sm:$0xff]   ;;  %206 = vmatprep.mubr.msk.bf16.mxu0 %vm222_vm1, %v221_v0  ;;  %23 = vst.msk [vmem:[#allocation2] sm:$0xff] %vm22_vm0, %v221_v0  ;;  %v213_v2 = vld [vmem:[%s296_s1 + $0x8] sm:$0xff]   ;;  %v214_v3 = vld [vmem:[%s296_s1 + $0x10] sm:$0xff]  }
   0x2   :  { %191 = vmatpush3.bf16.msra.mxu0 %v212_v1  ;;  %v215_v4 = vld [vmem:[%s296_s1 + $0x18] sm:$0xff]   ;;  %v216_v5 = vld [vmem:[%s296_s1 + $0x20] sm:$0xff]   ;;  %v217_v6 = vld [vmem:[%s296_s1 + $0x28] sm:$0xff]   ;;  %25 = vst.msk [vmem:[#allocation2 + $0x8] sm:$0x3] %vm24_vm2, %v221_v0 }
   0x3   :  { %192 = vmatprep.subr.bf16.mxu0 %v221_v0  ;;  %v218_v7 = vld [vmem:[%s296_s1 + $0x30] sm:$0xff]   ;;  %v219_v8 = vld [vmem:[%s296_s1 + $0x38] sm:$0xff]   ;;  %v220_v9 = vld [vmem:[%s297_s0] sm:$0x1f]  }
   0x4   :  { %v180_v18 = vld [vmem:[%s298_s2] ss:$0 sm:$0xff]  ;;  %v162_v23 = vld [vmem:[%s299_s3 + $0x8] sm:$0x3] }
   0x5   :  { %v161_v20 = vld [vmem:[%s299_s3] sm:$0xff] }
   0x6   :  { %193 = vmatpush3.bf16.msra.mxu0 %v213_v2 }
   0x7   :  { %194 = vmatprep.subr.bf16.mxu0 %v221_v0 }
   0x8   :  { %v26_v10 = vld [vmem:[#allocation2] sm:$0xff] }
   0x9   :  { %v27_v12 = vld [vmem:[#allocation2 + $0x8] sm:$0x3] }
   0xa   :  { %195 = vmatpush3.bf16.msra.mxu0 %v214_v3 }
   0xb   :  { %196 = vmatprep.subr.bf16.mxu0 %v221_v0 }
   0xe   :  { %197 = vmatpush3.bf16.msra.mxu0 %v215_v4 }
   0xf   :  { %198 = vmatprep.subr.bf16.mxu0 %v221_v0 }
  0x12   :  { %199 = vmatpush3.bf16.msra.mxu0 %v216_v5 }
  0x13   :  { %200 = vmatprep.subr.bf16.mxu0 %v221_v0 }
  0x16   :  { %201 = vmatpush3.bf16.msra.mxu0 %v217_v6 }
  0x17   :  { %202 = vmatprep.subr.bf16.mxu0 %v221_v0 }
  0x1a   :  { %203 = vmatpush3.bf16.msra.mxu0 %v218_v7 }
  0x1b   :  { %204 = vmatprep.subr.bf16.mxu0 %v221_v0 }
  0x1e   :  { %205 = vmatpush3.bf16.msra.mxu0 %v219_v8 }
  0x21   :  { %207 = vmatmul.mubr.bf16.vlgmr.msra.gmra.mrb[0].mxu0 %v220_v9 }
  0xf4   :  { %v134_v11 = vpop.f32.mrb[0].mxu0 }
  0xf5   :  { %v141_v13 = vadd.f32 %v134_v11, %v26_v10  ;;  %v208_v14 = vpop.f32.mrb[1].mxu0 }
  0xf6   :  { %v137_v15 = vpop.f32.mrb[2].mxu0 }
  0xf7   :  { %144 = vst.msk [vmem:[#allocation2] sm:$0xff] %vm22_vm0, %v141_v13  ;;  %v142_v16 = vadd.f32 %v137_v15, %v27_v12  ;;  %v209_v17 = vpop.f32.mrb[3].mxu0 }
  0xf9   :  { %146 = vst.msk [vmem:[#allocation2 + $0x8] sm:$0x3] %vm24_vm2, %v142_v16 }
  0xfe   :  { %v150_v19 = vld [vmem:[#allocation2] sm:$0xff] }
  0xff   :  { %v159_v21 = vadd.f32 %v180_v18, %v150_v19 }
 0x100   :  { %v151_v22 = vld [vmem:[#allocation2 + $0x8] sm:$0x3] }
 0x101   :  { %v163_v24 = vadd.f32 %v161_v20, %v159_v21  ;;  %v160_v25 = vadd.f32 %v180_v18, %v151_v22 }
 0x103   :  { %165 = vst.msk [vmem:[%s300_s4] sm:$0xff] %vm22_vm0, %v163_v24  ;;  %v164_v26 = vadd.f32 %v162_v23, %v160_v25 }
 0x105   :  { %166 = vst.msk [vmem:[%s300_s4 + $0x8] sm:$0x3] %vm24_vm2, %v164_v26 }

// kernel: vit_forward.16
= control target key start
LH: loop header
LB: loop body
LE: loop exit
PB: predicated region body
PF: predicated region fallthrough
CT: control target
= control target key end

     0   :  { %vm23_vm0 = vcmask 261120   ;;  %vm27_vm1 = vcmask 254976   ;;  %v243_v15 = vmov 0.0   ;;  %vm244_vm2 = vmmov 0   ;;  %s305_s0 = inlined_call_operand.vmem [shape: f32[10,32], index: 0, kind: input, shape index: {}]   ;;  %s306_s3 = inlined_call_operand.vmem [shape: bf16[32,128], index: 3, kind: input, shape index: {}]   ;;  %s307_s1 = inlined_call_operand.vmem [shape: f32[1,32], index: 1, kind: input, shape index: {}]   ;;  %s308_s2 = inlined_call_operand.vmem [shape: f32[1,32], index: 2, kind: input, shape index: {}]   ;;  %s309_s4 = inlined_call_operand.vmem [shape: f32[1,128], index: 4, kind: input, shape index: {}]   ;;  %s310_s5 = inlined_call_operand.vmem [shape: bf16[10,128], index: 5, kind: output, shape index: {}]  }
   0x1   :  { %v21_v0 = vld [vmem:[%s305_s0] sm:$0xff]  ;;  %v22_v1 = vld [vmem:[%s305_s0 + $0x8] sm:$0x3]  ;;  %219 = vmatprep.subr.bf16.mxu0 %v243_v15  ;;  %223 = vmatprep.mubr.msk.bf16.mxu0 %vm244_vm2, %v243_v15 }
   0x2   :  { %v24_v2 = vsel %vm23_vm0, %v21_v0, 0.0  ;;  %v28_v3 = vsel %vm27_vm1, %v22_v1, 0.0  ;;  %v229_v14 = vld [vmem:[%s306_s3] sm:$0xff]   ;;  %v230_v16 = vld [vmem:[%s306_s3 + $0x8] sm:$0xff]  }
   0x3   :  { %25 = vadd.xlane.f32.xlu0 %v24_v2  ;;  %220 = vmatpush3.bf16.msra.mxu0 %v229_v14  ;;  %v206_v25 = vld [vmem:[%s307_s1] ss:$0 sm:$0xff] }
   0x4   :  { %221 = vmatprep.subr.bf16.mxu0 %v243_v15  ;;  %v207_v29 = vld [vmem:[%s308_s2] ss:$0 sm:$0xff] }
   0x5   :  { %v208_v34 = vld [vmem:[%s309_s4] ss:$0 sm:$0xff] }
   0x7   :  { %29 = vadd.xlane.f32.xlu0 %v28_v3  ;;  %222 = vmatpush3.bf16.msra.mxu0 %v230_v16 }
  0x90   :  { %v26_v4 = vpop.xlane.xlu0 %25 }
  0x91   :  { %v32_v5 = vmul.f32 0.03125, %v26_v4 }
  0x93   :  { %v34_v6 = vsub.f32 %v21_v0, %v32_v5 }
  0x94   :  { %v30_v7 = vpop.xlane.xlu0 %29 }
  0x95   :  { %v33_v8 = vmul.f32 0.03125, %v30_v7  ;;  %v36_v9 = vmul.f32 %v34_v6, %v34_v6 }
  0x97   :  { %v35_v10 = vsub.f32 %v22_v1, %v33_v8  ;;  %v38_v11 = vsel %vm23_vm0, %v36_v9, 0.0 }
  0x98   :  { %39 = vadd.xlane.f32.xlu1 %v38_v11 }
  0x99   :  { %v37_v12 = vmul.f32 %v35_v10, %v35_v10 }
  0x9b   :  { %v41_v13 = vsel %vm27_vm1, %v37_v12, 0.0 }
  0x9c   :  { %42 = vadd.xlane.f32.xlu1 %v41_v13 }
 0x125   :  { %v40_v17 = vpop.xlane.xlu1 %39 }
 0x126   :  { %v44_v18 = vmul.f32 0.03125, %v40_v17 }
 0x128   :  { %v46_v19 = vadd.f32 1e-05, %v44_v18 }
 0x129   :  { %v43_v20 = vpop.xlane.xlu1 %42 }
 0x12a   :  { %231 = vrsqrt.f32 %v46_v19  ;;  %v45_v21 = vmul.f32 0.03125, %v43_v20 }
 0x12c   :  { %v47_v22 = vadd.f32 1e-05, %v45_v21 }
 0x12e   :  { %233 = vrsqrt.f32 %v47_v22 }
 0x134   :  { %v232_v23 = vpop.eup %231 }
 0x135   :  { %v50_v24 = vmul.f32 %v232_v23, %v34_v6 }
 0x137   :  { %v59_v28 = vmul.f32 %v206_v25, %v50_v24 }
 0x138   :  { %v234_v26 = vpop.eup %233 }
 0x139   :  { %v51_v27 = vmul.f32 %v234_v26, %v35_v10  ;;  %v68_v31 = vadd.f32 %v207_v29, %v59_v28 }
 0x13b   :  { %v60_v30 = vmul.f32 %v206_v25, %v51_v27 }
 0x13d   :  { %v69_v32 = vadd.f32 %v207_v29, %v60_v30 }
 0x13f   :  { %v70_v33 = vpack.c.bf16 %v69_v32, %v68_v31 }
 0x141   :  { %224 = vmatmul.mubr.msk.bf16.vlgmr.msra.gmra.mrb[0].mxu0 %vm23_vm0, %v70_v33 }
 0x214   :  { %v131_v35 = vpop.f32.mrb[0].mxu0 }
 0x215   :  { %v132_v36 = vadd.f32 %v208_v34, %v131_v35  ;;  %v225_v37 = vpop.f32.mrb[1].mxu0 }
 0x216   :  { %v134_v38 = vpop.f32.mrb[2].mxu0 }
 0x217   :  { %v140_v39 = vmul.f32 0.70710677, %v132_v36  ;;  %v135_v40 = vadd.f32 %v208_v34, %v134_v38  ;;  %v226_v41 = vpop.f32.mrb[3].mxu0  ;;  %v138_v19 = vmul.f32 0.5, %v132_v36 }
 0x219   :  { %v142_v42 = vand.u32 2147483647, %v140_v39  ;;  %v141_v43 = vmul.f32 0.70710677, %v135_v40  ;;  %vm182_vm3 = vcmp.ge.f32.partialorder %v140_v39, 0.0  ;;  %v139_v24 = vmul.f32 0.5, %v135_v40 }
 0x21b   :  { %v144_v44 = vmul.f32 0.3275911, %v142_v42  ;;  %v143_v45 = vand.u32 2147483647, %v141_v43  ;;  %v170_v49 = vsub.f32 0.0, %v142_v42  ;;  %vm183_vm4 = vcmp.ge.f32.partialorder %v141_v43, 0.0 }
 0x21d   :  { %v146_v46 = vadd.f32 1.0, %v144_v44  ;;  %v145_v47 = vmul.f32 0.3275911, %v143_v45  ;;  %v171_v50 = vsub.f32 0.0, %v143_v45  ;;  %v172_v52 = vmul.f32 %v170_v49, %v142_v42 }
 0x21f   :  { %235 = vrcp.f32 %v146_v46  ;;  %v147_v48 = vadd.f32 1.0, %v145_v47  ;;  %v173_v56 = vmul.f32 %v171_v50, %v143_v45  ;;  %v174_v57 = vmul.f32 1.442695, %v172_v52 }
 0x221   :  { %237 = vrcp.f32 %v147_v48  ;;  %v176_v62 = vmul.f32 1.442695, %v173_v56 }
 0x222   :  { %239 = vpow2.f32 %v174_v57 }
 0x223   :  { %241 = vpow2.f32 %v176_v62 }
 0x229   :  { %v236_v51 = vpop.eup %235 }
 0x22a   :  { %v152_v53 = vmul.f32 1.0614054, %v236_v51 }
 0x22b   :  { %v238_v54 = vpop.eup %237 }
 0x22c   :  { %v154_v55 = vadd.f32 -1.4531521, %v152_v53  ;;  %v153_v58 = vmul.f32 1.0614054, %v238_v54  ;;  %v240_v9 = vpop.eup %239 }
 0x22d   :  { %v242_v13 = vpop.eup %241 }
 0x22e   :  { %v156_v59 = vmul.f32 %v236_v51, %v154_v55  ;;  %v155_v60 = vadd.f32 -1.4531521, %v153_v58 }
 0x230   :  { %v158_v61 = vadd.f32 1.4214138, %v156_v59  ;;  %v157_v63 = vmul.f32 %v238_v54, %v155_v60 }
 0x232   :  { %v160_v0 = vmul.f32 %v236_v51, %v158_v61  ;;  %v159_v1 = vadd.f32 1.4214138, %v157_v63 }
 0x234   :  { %v162_v2 = vadd.f32 -0.28449672, %v160_v0  ;;  %v161_v3 = vmul.f32 %v238_v54, %v159_v1 }
 0x236   :  { %v164_v4 = vmul.f32 %v236_v51, %v162_v2  ;;  %v163_v5 = vadd.f32 -0.28449672, %v161_v3 }
 0x238   :  { %v166_v6 = vadd.f32 0.2548296, %v164_v4  ;;  %v165_v7 = vmul.f32 %v238_v54, %v163_v5 }
 0x23a   :  { %v168_v8 = vmul.f32 %v236_v51, %v166_v6  ;;  %v167_v10 = vadd.f32 0.2548296, %v165_v7 }
 0x23c   :  { %v178_v11 = vmul.f32 %v240_v9, %v168_v8  ;;  %v169_v12 = vmul.f32 %v238_v54, %v167_v10 }
 0x23e   :  { %v180_v14 = vsub.f32 1.0, %v178_v11  ;;  %v179_v15 = vmul.f32 %v242_v13, %v169_v12 }
 0x240   :  { %v184_v16 = vsub.f32 0.0, %v180_v14  ;;  %v181_v17 = vsub.f32 1.0, %v179_v15 }
 0x242   :  { %v186_v18 = vsel %vm182_vm3, %v180_v14, %v184_v16  ;;  %v185_v21 = vsub.f32 0.0, %v181_v17 }
 0x243   :  { %v188_v20 = vadd.f32 1.0, %v186_v18 }
 0x244   :  { %v187_v23 = vsel %vm183_vm4, %v181_v17, %v185_v21 }
 0x245   :  { %v190_v22 = vmul.f32 %v188_v20, %v138_v19  ;;  %v189_v25 = vadd.f32 1.0, %v187_v23 }
 0x247   :  { %v214_v26 = vpack.c.bf16 %v190_v22, %v190_v22  ;;  %v191_v27 = vmul.f32 %v189_v25, %v139_v24 }
 0x249   :  { %200 = vst [vmem:[%s310_s5] sm:$0xf] %v214_v26  ;;  %v215_v28 = vpack.c.bf16 %v191_v27, %v191_v27 }
 0x24b   :  { %201 = vst [vmem:[%s310_s5 + $0x4] sm:$0x1] %v215_v28 }

</bundles_post_ra>
